<compile_context>
chip_gen: v6e
topology: v6e:2x2x1
jax: 0.10.0
libtpu: 0.0.40
codegen_flags: <defaults>
</compile_context>

<pallas_src>
import numpy as np
import jax
import jax.numpy as jnp
from jax.experimental import pallas as pl
from jax.experimental.pallas import tpu as pltpu

# ----------------------------- model config ---------------------------------
BATCH = 2
IMSIZE = 16               # square Omniglot-style input, 1 channel
NUM_LAYERS = 4
NUM_FILTERS = 8
NUM_CLASSES_OUT = 5
BN_EPS = 1e-5

BLOCK_DIMS = []           # (input spatial size, input channels) per conv block
_s, _c = IMSIZE, 1
for _ in range(NUM_LAYERS):
    BLOCK_DIMS.append((_s, _c))
    _s, _c = _s // 2, NUM_FILTERS

_WM_WIDTH = 3 * IMSIZE * NUM_FILTERS    # 384 lanes: bf16 packed MXU operands
_PM_WIDTH = IMSIZE * NUM_FILTERS        # 128 lanes: f32 packed VPU-side params


def _round8(n):
    return ((n + 7) // 8) * 8


def _build_plan():
    """Static packing plan: row offsets of every operand in the two packed slabs."""
    layers, wrow, prow = [], 0, 0

    def _add(rows, cols):
        nonlocal wrow
        ent = (wrow, rows, cols)
        wrow = _round8(wrow + rows)            # sublane-tile-aligned offsets
        return ent

    for (S, c_in) in BLOCK_DIMS:
        s2 = S // 2
        lp = {
            "conv": _add(S * c_in, 3 * S * NUM_FILTERS),       # wide 3x3 conv matrix
            "rp": _add(BATCH * s2, BATCH * S),                  # pool row compaction
            "cp": _add(S * NUM_FILTERS, s2 * NUM_FILTERS),      # pool col compaction
        }
        if s2 > 1:
            lp["warp"] = _add(s2 * NUM_FILTERS, 3 * s2 * NUM_FILTERS)
        else:                                  # 1x1 spatial: only the centre tap survives
            lp["warp"] = _add(NUM_FILTERS, NUM_FILTERS)
        lp["pbase"] = prow                     # 6 param rows per layer (see init_params)
        prow = _round8(prow + 6)
        layers.append(lp)
    head_w = _add(NUM_FILTERS, NUM_CLASSES_OUT)
    head_b = prow
    prow = _round8(prow + 1)
    return {"layers": layers, "head_w": head_w, "head_b": head_b,
            "wm_shape": (wrow, _WM_WIDTH), "pm_shape": (prow, _PM_WIDTH)}


PLAN = _build_plan()
_VMEM = pl.BlockSpec(memory_space=pltpu.MemorySpace.VMEM)


# ------------------------------ kernel body ----------------------------------
def _dot(a, b):
    """MXU matmul: bf16 operands (0/1 selectors are exact), f32 accumulation."""
    return jnp.dot(a.astype(jnp.bfloat16), b.astype(jnp.bfloat16),
                   preferred_element_type=jnp.float32)


def _roll(x, shift, axis):
    """Cyclic roll with a static, positive-normalised shift (XLU, off the MXU)."""
    return pltpu.roll(x, shift % x.shape[axis], axis)


def _wslice(ref, ent):
    r0, nr, nc = ent
    return ref[r0:r0 + nr, 0:nc]


def _conv3x3(slab, wmat, bias, S):
    """3x3 same-padding conv on an (N*S, S*Cin) slab -> (N*S, S*F).

    One wide MXU matmul produces all three kh tap segments; the vertical
    (kh=0 / kh=2) taps are aligned with a sublane roll + boundary mask.
    """
    W = S * NUM_FILTERS
    wide = _dot(slab, wmat)                        # (N*S, 3*W)
    mid = wide[:, W:2 * W]
    up = _roll(wide[:, 0:W], 1, 0)                 # output row y reads row y-1
    dn = _roll(wide[:, 2 * W:3 * W], -1, 0)        # output row y reads row y+1
    row = jax.lax.broadcasted_iota(jnp.int32, mid.shape, 0) & (S - 1)   # y = i mod S
    up = jnp.where(row == 0, 0.0, up)              # zero-padding at image top
    dn = jnp.where(row == S - 1, 0.0, dn)          # zero-padding at image bottom
    return mid + up + dn + bias


def _conv1x1(slab, wmat, bias):
    """Degenerate 3x3 conv on a 1x1 spatial slab: only the centre tap remains."""
    return _dot(slab, wmat) + bias


def _maxpool2(o, rp0, cp0):
    """2x2/2 max-pool: (N*S, S*F) -> (N*S/2, (S/2)*F).

    Pairwise maxima via sublane/lane rolls (VPU/XLU); one row- and one
    column-compaction matmul keep only the even rows / column groups.
    """
    rmax = jnp.maximum(o, _roll(o, -1, 0))
    cmax = jnp.maximum(rmax, _roll(rmax, -NUM_FILTERS, 1))
    return _dot(_dot(rp0, cmax), cp0)


def _batchnorm(p, gamma_t, beta_t, s2, relu):
    """Training-mode BatchNorm2d (+ optional ReLU) on an (N*s2, s2*F) slab.

    gamma_t / beta_t arrive pre-tiled to lane width s2*F.  Stats use one
    concatenated sublane reduction + a log2(s2) lane roll-and-add all-reduce:
    no MXU matmuls and no in-kernel broadcasts.
    """
    W = s2 * NUM_FILTERS
    inv = 1.0 / (p.shape[0] * s2)                  # N * s2 * s2 samples per channel
    r = jnp.sum(jnp.concatenate([p, p * p], axis=1), axis=0, keepdims=True)
    rsum, rsq = r[:, 0:W], r[:, W:2 * W]
    k = NUM_FILTERS
    while k < W:                                   # cyclic all-reduce over the s2 x-groups
        rsum = rsum + _roll(rsum, -k, 1)
        rsq = rsq + _roll(rsq, -k, 1)
        k *= 2
    mean = rsum * inv
    var = jnp.maximum(rsq * inv - mean * mean, 0.0)
    scale = gamma_t * jax.lax.rsqrt(var + BN_EPS)
    shift = beta_t - mean * scale
    y = p * scale + shift
    return jnp.maximum(y, 0.0) if relu else y


def fused_forward_kernel(x_ref, wm_ref, pm_ref, out_ref):
    """Entire WarpedOmniConv forward; every intermediate stays in vregs/VMEM."""
    F = NUM_FILTERS
    h = x_ref[...]                                              # (N*16, 16) input slab
    for li, (S, _cin) in enumerate(BLOCK_DIMS):
        s2 = S // 2
        lp = PLAN["layers"][li]
        p0 = lp["pbase"]
        conv_b = pm_ref[p0:p0 + 1, 0:S * F]
        warp_b = pm_ref[p0 + 1:p0 + 2, 0:s2 * F]
        bn1_g = pm_ref[p0 + 2:p0 + 3, 0:s2 * F]
        bn1_b = pm_ref[p0 + 3:p0 + 4, 0:s2 * F]
        bn2_g = pm_ref[p0 + 4:p0 + 5, 0:s2 * F]
        bn2_b = pm_ref[p0 + 5:p0 + 6, 0:s2 * F]
        # conv block: Conv2d(3x3, pad=1) -> MaxPool2d(2) -> BatchNorm2d -> ReLU
        o = _conv3x3(h, _wslice(wm_ref, lp["conv"]), conv_b, S)
        pooled = _maxpool2(o, _wslice(wm_ref, lp["rp"]), _wslice(wm_ref, lp["cp"]))
        hb = _batchnorm(pooled, bn1_g, bn1_b, s2, relu=True)
        # warp layer: BatchNorm2d (bn_in) -> Conv2d(3x3, pad=1); no act / residual
        wn = _batchnorm(hb, bn2_g, bn2_b, s2, relu=False)
        if s2 > 1:
            h = _conv3x3(wn, _wslice(wm_ref, lp["warp"]), warp_b, s2)
        else:
            h = _conv1x1(wn, _wslice(wm_ref, lp["warp"]), warp_b)
    # Squeeze(): final slab is (N*1, 1*F) == (N, F).  Head: nn.Linear(F, classes).
    hb_row = PLAN["head_b"]
    out_ref[...] = (_dot(h, _wslice(wm_ref, PLAN["head_w"]))
                    + pm_ref[hb_row:hb_row + 1, 0:NUM_CLASSES_OUT])


# ---------------------- host-side constant / weight packing ------------------
def _conv_wide_mat(w_fckk, S):
    """Conv2d weight (F, Cin, 3, 3) -> (S*Cin, 3*S*F) block-band matrix.

    Horizontal (kw) taps are folded into the weights; the three kh tap
    outputs land in three lane segments of width S*F each.
    """
    F, Ci = w_fckk.shape[0], w_fckk.shape[1]
    m = np.zeros((S * Ci, 3 * S * F), np.float32)
    for kh in range(3):
        off = kh * S * F
        for kw in range(3):
            blk = w_fckk[:, :, kh, kw].T                        # (Cin, F)
            for x in range(S):
                xs = x + kw - 1
                if 0 <= xs < S:
                    m[xs * Ci:(xs + 1) * Ci, off + x * F:off + (x + 1) * F] = blk
    return m


def _pool_row_mat(S):
    s2 = S // 2
    rp = np.zeros((BATCH * s2, BATCH * S), np.float32)
    for n in range(BATCH):
        for y2 in range(s2):
            rp[n * s2 + y2, n * S + 2 * y2] = 1.0
    return rp


def _pool_col_mat(S):
    F, s2 = NUM_FILTERS, S // 2
    cp = np.zeros((S * F, s2 * F), np.float32)
    for x2 in range(s2):
        for f in range(F):
            cp[2 * x2 * F + f, x2 * F + f] = 1.0
    return cp


def init_params(key):
    """Random module parameters, packed into two arrays (one DMA each):
       wm: all MXU operands (bf16); pm: all VPU-side params (f32, pre-tiled)."""
    F = NUM_FILTERS
    wm = np.zeros(PLAN["wm_shape"], np.float32)
    pm = np.zeros(PLAN["pm_shape"], np.float32)
    keys = iter(jax.random.split(key, NUM_LAYERS * 4 + 2))

    def put(ent, mat):
        r0, nr, nc = ent
        assert mat.shape == (nr, nc), (mat.shape, ent)
        wm[r0:r0 + nr, 0:nc] = mat

    for li, (S, c_in) in enumerate(BLOCK_DIMS):
        s2 = S // 2
        lp = PLAN["layers"][li]
        conv_w = np.asarray(0.1 * jax.random.normal(next(keys), (F, c_in, 3, 3)), np.float32)
        conv_b = np.asarray(0.1 * jax.random.normal(next(keys), (F,)), np.float32)
        warp_w = np.asarray(0.1 * jax.random.normal(next(keys), (F, F, 3, 3)), np.float32)
        warp_b = np.asarray(0.1 * jax.random.normal(next(keys), (F,)), np.float32)
        put(lp["conv"], _conv_wide_mat(conv_w, S))
        put(lp["rp"], _pool_row_mat(S))
        put(lp["cp"], _pool_col_mat(S))
        if s2 > 1:
            put(lp["warp"], _conv_wide_mat(warp_w, s2))
        else:
            put(lp["warp"], np.ascontiguousarray(warp_w[:, :, 1, 1].T))
        p0 = lp["pbase"]
        pm[p0 + 0, 0:S * F] = np.tile(conv_b, S)         # conv bias, tiled to S*F lanes
        pm[p0 + 1, 0:s2 * F] = np.tile(warp_b, s2)       # warp conv bias, tiled
        # PyTorch BatchNorm2d affine init: weight=1, bias=0 (conv-block BN & warp bn_in),
        # pre-tiled to lane width s2*F so the kernel needs no broadcast.
        pm[p0 + 2, 0:s2 * F] = 1.0
        pm[p0 + 3, 0:s2 * F] = 0.0
        pm[p0 + 4, 0:s2 * F] = 1.0
        pm[p0 + 5, 0:s2 * F] = 0.0
    # nn.Linear weights are stored (out, in) in PyTorch; packed here as (in, out).
    head_w = np.asarray(0.1 * jax.random.normal(next(keys), (F, NUM_CLASSES_OUT)), np.float32)
    head_b = np.asarray(0.1 * jax.random.normal(next(keys), (NUM_CLASSES_OUT,)), np.float32)
    put(PLAN["head_w"], head_w)
    pm[PLAN["head_b"], 0:NUM_CLASSES_OUT] = head_b
    return jnp.asarray(wm, dtype=jnp.bfloat16), jnp.asarray(pm, dtype=jnp.float32)


# ------------------------------ forward --------------------------------------
@jax.jit
def warped_omniconv_forward(wm, pm, x_nchw):
    """Forward pass: exactly one fused, gridless pallas_call (3 input DMAs)."""
    # NCHW (N, 1, H, W) -> lane-dense (N*H, W*Cin) slab (Cin = 1).
    x_slab = x_nchw.astype(jnp.float32).reshape(BATCH * IMSIZE, IMSIZE)
    return pl.pallas_call(
        fused_forward_kernel,
        out_shape=jax.ShapeDtypeStruct((BATCH, NUM_CLASSES_OUT), jnp.float32),
        in_specs=[_VMEM, _VMEM, _VMEM],
        out_specs=_VMEM,
    )(x_slab, wm, pm)


# -------------------------------- main ----------------------------------------
if __name__ == "__main__":
    key = jax.random.PRNGKey(0)
    kx, kp = jax.random.split(key)
    x = jax.random.normal(kx, (BATCH, 1, IMSIZE, IMSIZE), jnp.float32)   # NCHW input
    wm, pm = init_params(kp)

    out = warped_omniconv_forward(wm, pm, x)
    jax.block_until_ready(out)

    assert out.shape == (BATCH, NUM_CLASSES_OUT), out.shape
    assert out.dtype == jnp.float32
    assert bool(jnp.all(jnp.isfinite(out)))
    print("KERNEL_OK")
</pallas_src>

<mosaic_0001>
module attributes {stable_mosaic.version = 11 : i64} {
  func.func @fused_forward_kernel(%arg0: memref<32x16xf32, #tpu.memory_space<vmem>>, %arg1: memref<536x384xbf16, #tpu.memory_space<vmem>>, %arg2: memref<40x128xf32, #tpu.memory_space<vmem>>, %arg3: memref<2x5xf32, #tpu.memory_space<vmem>>) attributes {dimension_semantics = [], scalar_prefetch = 0 : i64, scratch_operands = 0 : i64, tpu.core_type = #tpu.core_type<tc>} {
    %c0 = arith.constant 0 : index
    %c0_0 = arith.constant 0 : index
    %0 = vector.load %arg0[%c0, %c0_0] : memref<32x16xf32, #tpu.memory_space<vmem>>, vector<32x16xf32>
    %c0_1 = arith.constant 0 : index
    %c0_2 = arith.constant 0 : index
    %1 = vector.load %arg2[%c0_1, %c0_2] : memref<40x128xf32, #tpu.memory_space<vmem>>, vector<1x128xf32>
    %c1 = arith.constant 1 : index
    %c0_3 = arith.constant 0 : index
    %2 = vector.load %arg2[%c1, %c0_3] : memref<40x128xf32, #tpu.memory_space<vmem>>, vector<1x64xf32>
    %c2 = arith.constant 2 : index
    %c0_4 = arith.constant 0 : index
    %3 = vector.load %arg2[%c2, %c0_4] : memref<40x128xf32, #tpu.memory_space<vmem>>, vector<1x64xf32>
    %c3 = arith.constant 3 : index
    %c0_5 = arith.constant 0 : index
    %4 = vector.load %arg2[%c3, %c0_5] : memref<40x128xf32, #tpu.memory_space<vmem>>, vector<1x64xf32>
    %c4 = arith.constant 4 : index
    %c0_6 = arith.constant 0 : index
    %5 = vector.load %arg2[%c4, %c0_6] : memref<40x128xf32, #tpu.memory_space<vmem>>, vector<1x64xf32>
    %c5 = arith.constant 5 : index
    %c0_7 = arith.constant 0 : index
    %6 = vector.load %arg2[%c5, %c0_7] : memref<40x128xf32, #tpu.memory_space<vmem>>, vector<1x64xf32>
    %c0_8 = arith.constant 0 : index
    %c0_9 = arith.constant 0 : index
    %7 = vector.load %arg1[%c0_8, %c0_9] : memref<536x384xbf16, #tpu.memory_space<vmem>>, vector<16x384xbf16>
    %8 = arith.truncf %0 : vector<32x16xf32> to vector<32x16xbf16>
    %cst = arith.constant dense<0.000000e+00> : vector<32x384xf32>
    %9 = tpu.matmul %8, %7, %cst {dimension_numbers = #tpu.dot_dimension_numbers<[1], [0], [0], [1], [0, 0, 1, 1], [], []>} : vector<32x16xbf16>, vector<16x384xbf16>, vector<32x384xf32> -> vector<32x384xf32>
    %10 = vector.extract_strided_slice %9 {offsets = [0, 128], sizes = [32, 128], strides = [1, 1]} : vector<32x384xf32> to vector<32x128xf32>
    %11 = vector.extract_strided_slice %9 {offsets = [0, 0], sizes = [32, 128], strides = [1, 1]} : vector<32x384xf32> to vector<32x128xf32>
    %c1_i32 = arith.constant 1 : i32
    %12 = tpu.dynamic_rotate %11 by %c1_i32 dim 0 : vector<32x128xf32>, i32 -> vector<32x128xf32>
    %13 = vector.extract_strided_slice %9 {offsets = [0, 256], sizes = [32, 128], strides = [1, 1]} : vector<32x384xf32> to vector<32x128xf32>
    %c31_i32 = arith.constant 31 : i32
    %14 = tpu.dynamic_rotate %13 by %c31_i32 dim 0 : vector<32x128xf32>, i32 -> vector<32x128xf32>
    %15 = tpu.iota {dimensions = array<i32: 0>} : vector<32x128xi32>
    %c15_i32 = arith.constant 15 : i32
    %16 = vector.broadcast %c15_i32 : i32 to vector<32x128xi32>
    %17 = arith.andi %15, %16 : vector<32x128xi32>
    %c0_i32 = arith.constant 0 : i32
    %18 = vector.broadcast %c0_i32 : i32 to vector<32x128xi32>
    %19 = arith.cmpi eq, %17, %18 : vector<32x128xi32>
    %cst_10 = arith.constant 0.000000e+00 : f32
    %20 = vector.broadcast %cst_10 : f32 to vector<32x128xf32>
    %21 = arith.select %19, %20, %12 : vector<32x128xi1>, vector<32x128xf32>
    %c15_i32_11 = arith.constant 15 : i32
    %22 = vector.broadcast %c15_i32_11 : i32 to vector<32x128xi32>
    %23 = arith.cmpi eq, %17, %22 : vector<32x128xi32>
    %cst_12 = arith.constant 0.000000e+00 : f32
    %24 = vector.broadcast %cst_12 : f32 to vector<32x128xf32>
    %25 = arith.select %23, %24, %14 : vector<32x128xi1>, vector<32x128xf32>
    %26 = arith.addf %10, %21 : vector<32x128xf32>
    %27 = arith.addf %26, %25 : vector<32x128xf32>
    %28 = vector.broadcast %1 : vector<1x128xf32> to vector<32x128xf32>
    %29 = arith.addf %27, %28 : vector<32x128xf32>
    %c16 = arith.constant 16 : index
    %c0_13 = arith.constant 0 : index
    %30 = vector.load %arg1[%c16, %c0_13] : memref<536x384xbf16, #tpu.memory_space<vmem>>, vector<16x32xbf16>
    %c32 = arith.constant 32 : index
    %c0_14 = arith.constant 0 : index
    %31 = vector.load %arg1[%c32, %c0_14] : memref<536x384xbf16, #tpu.memory_space<vmem>>, vector<128x64xbf16>
    %c31_i32_15 = arith.constant 31 : i32
    %32 = tpu.dynamic_rotate %29 by %c31_i32_15 dim 0 : vector<32x128xf32>, i32 -> vector<32x128xf32>
    %33 = arith.maximumf %29, %32 : vector<32x128xf32>
    %c120_i32 = arith.constant 120 : i32
    %34 = tpu.dynamic_rotate %33 by %c120_i32 dim 1 : vector<32x128xf32>, i32 -> vector<32x128xf32>
    %35 = arith.maximumf %33, %34 : vector<32x128xf32>
    %36 = arith.truncf %35 : vector<32x128xf32> to vector<32x128xbf16>
    %cst_16 = arith.constant dense<0.000000e+00> : vector<16x128xf32>
    %37 = tpu.matmul %30, %36, %cst_16 {dimension_numbers = #tpu.dot_dimension_numbers<[1], [0], [0], [1], [0, 0, 1, 1], [], []>} : vector<16x32xbf16>, vector<32x128xbf16>, vector<16x128xf32> -> vector<16x128xf32>
    %38 = arith.truncf %37 : vector<16x128xf32> to vector<16x128xbf16>
    %cst_17 = arith.constant dense<0.000000e+00> : vector<16x64xf32>
    %39 = tpu.matmul %38, %31, %cst_17 {dimension_numbers = #tpu.dot_dimension_numbers<[1], [0], [0], [1], [0, 0, 1, 1], [], []>} : vector<16x128xbf16>, vector<128x64xbf16>, vector<16x64xf32> -> vector<16x64xf32>
    %40 = arith.mulf %39, %39 : vector<16x64xf32>
    %41 = tpu.concatenate %39, %40 in 1 : vector<16x64xf32>, vector<16x64xf32> -> vector<16x128xf32>
    %cst_18 = arith.constant dense<0.000000e+00> : vector<128xf32>
    %42 = vector.multi_reduction <add>, %41, %cst_18 [0] : vector<16x128xf32> to vector<128xf32>
    %43 = vector.shape_cast %42 : vector<128xf32> to vector<1x128xf32>
    %44 = vector.extract_strided_slice %43 {offsets = [0, 0], sizes = [1, 64], strides = [1, 1]} : vector<1x128xf32> to vector<1x64xf32>
    %45 = vector.extract_strided_slice %43 {offsets = [0, 64], sizes = [1, 64], strides = [1, 1]} : vector<1x128xf32> to vector<1x64xf32>
    %c56_i32 = arith.constant 56 : i32
    %46 = tpu.dynamic_rotate %44 by %c56_i32 dim 1 : vector<1x64xf32>, i32 -> vector<1x64xf32>
    %47 = arith.addf %44, %46 : vector<1x64xf32>
    %c56_i32_19 = arith.constant 56 : i32
    %48 = tpu.dynamic_rotate %45 by %c56_i32_19 dim 1 : vector<1x64xf32>, i32 -> vector<1x64xf32>
    %49 = arith.addf %45, %48 : vector<1x64xf32>
    %c48_i32 = arith.constant 48 : i32
    %50 = tpu.dynamic_rotate %47 by %c48_i32 dim 1 : vector<1x64xf32>, i32 -> vector<1x64xf32>
    %51 = arith.addf %47, %50 : vector<1x64xf32>
    %c48_i32_20 = arith.constant 48 : i32
    %52 = tpu.dynamic_rotate %49 by %c48_i32_20 dim 1 : vector<1x64xf32>, i32 -> vector<1x64xf32>
    %53 = arith.addf %49, %52 : vector<1x64xf32>
    %c32_i32 = arith.constant 32 : i32
    %54 = tpu.dynamic_rotate %51 by %c32_i32 dim 1 : vector<1x64xf32>, i32 -> vector<1x64xf32>
    %55 = arith.addf %51, %54 : vector<1x64xf32>
    %c32_i32_21 = arith.constant 32 : i32
    %56 = tpu.dynamic_rotate %53 by %c32_i32_21 dim 1 : vector<1x64xf32>, i32 -> vector<1x64xf32>
    %57 = arith.addf %53, %56 : vector<1x64xf32>
    %cst_22 = arith.constant 7.812500e-03 : f32
    %58 = vector.broadcast %cst_22 : f32 to vector<1x64xf32>
    %59 = arith.mulf %55, %58 : vector<1x64xf32>
    %cst_23 = arith.constant 7.812500e-03 : f32
    %60 = vector.broadcast %cst_23 : f32 to vector<1x64xf32>
    %61 = arith.mulf %57, %60 : vector<1x64xf32>
    %62 = arith.mulf %59, %59 : vector<1x64xf32>
    %63 = arith.subf %61, %62 : vector<1x64xf32>
    %cst_24 = arith.constant 0.000000e+00 : f32
    %64 = vector.broadcast %cst_24 : f32 to vector<1x64xf32>
    %65 = arith.maximumf %63, %64 : vector<1x64xf32>
    %cst_25 = arith.constant 9.99999974E-6 : f32
    %66 = vector.broadcast %cst_25 : f32 to vector<1x64xf32>
    %67 = arith.addf %65, %66 : vector<1x64xf32>
    %68 = math.rsqrt %67 : vector<1x64xf32>
    %69 = arith.mulf %3, %68 : vector<1x64xf32>
    %70 = arith.mulf %59, %69 : vector<1x64xf32>
    %71 = arith.subf %4, %70 : vector<1x64xf32>
    %72 = vector.broadcast %69 : vector<1x64xf32> to vector<16x64xf32>
    %73 = arith.mulf %39, %72 : vector<16x64xf32>
    %74 = vector.broadcast %71 : vector<1x64xf32> to vector<16x64xf32>
    %75 = arith.addf %73, %74 : vector<16x64xf32>
    %cst_26 = arith.constant 0.000000e+00 : f32
    %76 = vector.broadcast %cst_26 : f32 to vector<16x64xf32>
    %77 = arith.maximumf %75, %76 : vector<16x64xf32>
    %78 = arith.mulf %77, %77 : vector<16x64xf32>
    %79 = tpu.concatenate %77, %78 in 1 : vector<16x64xf32>, vector<16x64xf32> -> vector<16x128xf32>
    %cst_27 = arith.constant dense<0.000000e+00> : vector<128xf32>
    %80 = vector.multi_reduction <add>, %79, %cst_27 [0] : vector<16x128xf32> to vector<128xf32>
    %81 = vector.shape_cast %80 : vector<128xf32> to vector<1x128xf32>
    %82 = vector.extract_strided_slice %81 {offsets = [0, 0], sizes = [1, 64], strides = [1, 1]} : vector<1x128xf32> to vector<1x64xf32>
    %83 = vector.extract_strided_slice %81 {offsets = [0, 64], sizes = [1, 64], strides = [1, 1]} : vector<1x128xf32> to vector<1x64xf32>
    %c56_i32_28 = arith.constant 56 : i32
    %84 = tpu.dynamic_rotate %82 by %c56_i32_28 dim 1 : vector<1x64xf32>, i32 -> vector<1x64xf32>
    %85 = arith.addf %82, %84 : vector<1x64xf32>
    %c56_i32_29 = arith.constant 56 : i32
    %86 = tpu.dynamic_rotate %83 by %c56_i32_29 dim 1 : vector<1x64xf32>, i32 -> vector<1x64xf32>
    %87 = arith.addf %83, %86 : vector<1x64xf32>
    %c48_i32_30 = arith.constant 48 : i32
    %88 = tpu.dynamic_rotate %85 by %c48_i32_30 dim 1 : vector<1x64xf32>, i32 -> vector<1x64xf32>
    %89 = arith.addf %85, %88 : vector<1x64xf32>
    %c48_i32_31 = arith.constant 48 : i32
    %90 = tpu.dynamic_rotate %87 by %c48_i32_31 dim 1 : vector<1x64xf32>, i32 -> vector<1x64xf32>
    %91 = arith.addf %87, %90 : vector<1x64xf32>
    %c32_i32_32 = arith.constant 32 : i32
    %92 = tpu.dynamic_rotate %89 by %c32_i32_32 dim 1 : vector<1x64xf32>, i32 -> vector<1x64xf32>
    %93 = arith.addf %89, %92 : vector<1x64xf32>
    %c32_i32_33 = arith.constant 32 : i32
    %94 = tpu.dynamic_rotate %91 by %c32_i32_33 dim 1 : vector<1x64xf32>, i32 -> vector<1x64xf32>
    %95 = arith.addf %91, %94 : vector<1x64xf32>
    %cst_34 = arith.constant 7.812500e-03 : f32
    %96 = vector.broadcast %cst_34 : f32 to vector<1x64xf32>
    %97 = arith.mulf %93, %96 : vector<1x64xf32>
    %cst_35 = arith.constant 7.812500e-03 : f32
    %98 = vector.broadcast %cst_35 : f32 to vector<1x64xf32>
    %99 = arith.mulf %95, %98 : vector<1x64xf32>
    %100 = arith.mulf %97, %97 : vector<1x64xf32>
    %101 = arith.subf %99, %100 : vector<1x64xf32>
    %cst_36 = arith.constant 0.000000e+00 : f32
    %102 = vector.broadcast %cst_36 : f32 to vector<1x64xf32>
    %103 = arith.maximumf %101, %102 : vector<1x64xf32>
    %cst_37 = arith.constant 9.99999974E-6 : f32
    %104 = vector.broadcast %cst_37 : f32 to vector<1x64xf32>
    %105 = arith.addf %103, %104 : vector<1x64xf32>
    %106 = math.rsqrt %105 : vector<1x64xf32>
    %107 = arith.mulf %5, %106 : vector<1x64xf32>
    %108 = arith.mulf %97, %107 : vector<1x64xf32>
    %109 = arith.subf %6, %108 : vector<1x64xf32>
    %110 = vector.broadcast %107 : vector<1x64xf32> to vector<16x64xf32>
    %111 = arith.mulf %77, %110 : vector<16x64xf32>
    %112 = vector.broadcast %109 : vector<1x64xf32> to vector<16x64xf32>
    %113 = arith.addf %111, %112 : vector<16x64xf32>
    %c160 = arith.constant 160 : index
    %c0_38 = arith.constant 0 : index
    %114 = vector.load %arg1[%c160, %c0_38] : memref<536x384xbf16, #tpu.memory_space<vmem>>, vector<64x192xbf16>
    %115 = arith.truncf %113 : vector<16x64xf32> to vector<16x64xbf16>
    %cst_39 = arith.constant dense<0.000000e+00> : vector<16x192xf32>
    %116 = tpu.matmul %115, %114, %cst_39 {dimension_numbers = #tpu.dot_dimension_numbers<[1], [0], [0], [1], [0, 0, 1, 1], [], []>} : vector<16x64xbf16>, vector<64x192xbf16>, vector<16x192xf32> -> vector<16x192xf32>
    %117 = vector.extract_strided_slice %116 {offsets = [0, 64], sizes = [16, 64], strides = [1, 1]} : vector<16x192xf32> to vector<16x64xf32>
    %118 = vector.extract_strided_slice %116 {offsets = [0, 0], sizes = [16, 64], strides = [1, 1]} : vector<16x192xf32> to vector<16x64xf32>
    %c1_i32_40 = arith.constant 1 : i32
    %119 = tpu.dynamic_rotate %118 by %c1_i32_40 dim 0 : vector<16x64xf32>, i32 -> vector<16x64xf32>
    %120 = vector.extract_strided_slice %116 {offsets = [0, 128], sizes = [16, 64], strides = [1, 1]} : vector<16x192xf32> to vector<16x64xf32>
    %c15_i32_41 = arith.constant 15 : i32
    %121 = tpu.dynamic_rotate %120 by %c15_i32_41 dim 0 : vector<16x64xf32>, i32 -> vector<16x64xf32>
    %122 = tpu.iota {dimensions = array<i32: 0>} : vector<16x64xi32>
    %c7_i32 = arith.constant 7 : i32
    %123 = vector.broadcast %c7_i32 : i32 to vector<16x64xi32>
    %124 = arith.andi %122, %123 : vector<16x64xi32>
    %c0_i32_42 = arith.constant 0 : i32
    %125 = vector.broadcast %c0_i32_42 : i32 to vector<16x64xi32>
    %126 = arith.cmpi eq, %124, %125 : vector<16x64xi32>
    %cst_43 = arith.constant 0.000000e+00 : f32
    %127 = vector.broadcast %cst_43 : f32 to vector<16x64xf32>
    %128 = arith.select %126, %127, %119 : vector<16x64xi1>, vector<16x64xf32>
    %c7_i32_44 = arith.constant 7 : i32
    %129 = vector.broadcast %c7_i32_44 : i32 to vector<16x64xi32>
    %130 = arith.cmpi eq, %124, %129 : vector<16x64xi32>
    %cst_45 = arith.constant 0.000000e+00 : f32
    %131 = vector.broadcast %cst_45 : f32 to vector<16x64xf32>
    %132 = arith.select %130, %131, %121 : vector<16x64xi1>, vector<16x64xf32>
    %133 = arith.addf %117, %128 : vector<16x64xf32>
    %134 = arith.addf %133, %132 : vector<16x64xf32>
    %135 = vector.broadcast %2 : vector<1x64xf32> to vector<16x64xf32>
    %136 = arith.addf %134, %135 : vector<16x64xf32>
    %c8 = arith.constant 8 : index
    %c0_46 = arith.constant 0 : index
    %137 = vector.load %arg2[%c8, %c0_46] : memref<40x128xf32, #tpu.memory_space<vmem>>, vector<1x64xf32>
    %c9 = arith.constant 9 : index
    %c0_47 = arith.constant 0 : index
    %138 = vector.load %arg2[%c9, %c0_47] : memref<40x128xf32, #tpu.memory_space<vmem>>, vector<1x32xf32>
    %c10 = arith.constant 10 : index
    %c0_48 = arith.constant 0 : index
    %139 = vector.load %arg2[%c10, %c0_48] : memref<40x128xf32, #tpu.memory_space<vmem>>, vector<1x32xf32>
    %c11 = arith.constant 11 : index
    %c0_49 = arith.constant 0 : index
    %140 = vector.load %arg2[%c11, %c0_49] : memref<40x128xf32, #tpu.memory_space<vmem>>, vector<1x32xf32>
    %c12 = arith.constant 12 : index
    %c0_50 = arith.constant 0 : index
    %141 = vector.load %arg2[%c12, %c0_50] : memref<40x128xf32, #tpu.memory_space<vmem>>, vector<1x32xf32>
    %c13 = arith.constant 13 : index
    %c0_51 = arith.constant 0 : index
    %142 = vector.load %arg2[%c13, %c0_51] : memref<40x128xf32, #tpu.memory_space<vmem>>, vector<1x32xf32>
    %c224 = arith.constant 224 : index
    %c0_52 = arith.constant 0 : index
    %143 = vector.load %arg1[%c224, %c0_52] : memref<536x384xbf16, #tpu.memory_space<vmem>>, vector<64x192xbf16>
    %144 = arith.truncf %136 : vector<16x64xf32> to vector<16x64xbf16>
    %cst_53 = arith.constant dense<0.000000e+00> : vector<16x192xf32>
    %145 = tpu.matmul %144, %143, %cst_53 {dimension_numbers = #tpu.dot_dimension_numbers<[1], [0], [0], [1], [0, 0, 1, 1], [], []>} : vector<16x64xbf16>, vector<64x192xbf16>, vector<16x192xf32> -> vector<16x192xf32>
    %146 = vector.extract_strided_slice %145 {offsets = [0, 64], sizes = [16, 64], strides = [1, 1]} : vector<16x192xf32> to vector<16x64xf32>
    %147 = vector.extract_strided_slice %145 {offsets = [0, 0], sizes = [16, 64], strides = [1, 1]} : vector<16x192xf32> to vector<16x64xf32>
    %c1_i32_54 = arith.constant 1 : i32
    %148 = tpu.dynamic_rotate %147 by %c1_i32_54 dim 0 : vector<16x64xf32>, i32 -> vector<16x64xf32>
    %149 = vector.extract_strided_slice %145 {offsets = [0, 128], sizes = [16, 64], strides = [1, 1]} : vector<16x192xf32> to vector<16x64xf32>
    %c15_i32_55 = arith.constant 15 : i32
    %150 = tpu.dynamic_rotate %149 by %c15_i32_55 dim 0 : vector<16x64xf32>, i32 -> vector<16x64xf32>
    %151 = tpu.iota {dimensions = array<i32: 0>} : vector<16x64xi32>
    %c7_i32_56 = arith.constant 7 : i32
    %152 = vector.broadcast %c7_i32_56 : i32 to vector<16x64xi32>
    %153 = arith.andi %151, %152 : vector<16x64xi32>
    %c0_i32_57 = arith.constant 0 : i32
    %154 = vector.broadcast %c0_i32_57 : i32 to vector<16x64xi32>
    %155 = arith.cmpi eq, %153, %154 : vector<16x64xi32>
    %cst_58 = arith.constant 0.000000e+00 : f32
    %156 = vector.broadcast %cst_58 : f32 to vector<16x64xf32>
    %157 = arith.select %155, %156, %148 : vector<16x64xi1>, vector<16x64xf32>
    %c7_i32_59 = arith.constant 7 : i32
    %158 = vector.broadcast %c7_i32_59 : i32 to vector<16x64xi32>
    %159 = arith.cmpi eq, %153, %158 : vector<16x64xi32>
    %cst_60 = arith.constant 0.000000e+00 : f32
    %160 = vector.broadcast %cst_60 : f32 to vector<16x64xf32>
    %161 = arith.select %159, %160, %150 : vector<16x64xi1>, vector<16x64xf32>
    %162 = arith.addf %146, %157 : vector<16x64xf32>
    %163 = arith.addf %162, %161 : vector<16x64xf32>
    %164 = vector.broadcast %137 : vector<1x64xf32> to vector<16x64xf32>
    %165 = arith.addf %163, %164 : vector<16x64xf32>
    %c288 = arith.constant 288 : index
    %c0_61 = arith.constant 0 : index
    %166 = vector.load %arg1[%c288, %c0_61] : memref<536x384xbf16, #tpu.memory_space<vmem>>, vector<8x16xbf16>
    %c296 = arith.constant 296 : index
    %c0_62 = arith.constant 0 : index
    %167 = vector.load %arg1[%c296, %c0_62] : memref<536x384xbf16, #tpu.memory_space<vmem>>, vector<64x32xbf16>
    %c15_i32_63 = arith.constant 15 : i32
    %168 = tpu.dynamic_rotate %165 by %c15_i32_63 dim 0 : vector<16x64xf32>, i32 -> vector<16x64xf32>
    %169 = arith.maximumf %165, %168 : vector<16x64xf32>
    %c56_i32_64 = arith.constant 56 : i32
    %170 = tpu.dynamic_rotate %169 by %c56_i32_64 dim 1 : vector<16x64xf32>, i32 -> vector<16x64xf32>
    %171 = arith.maximumf %169, %170 : vector<16x64xf32>
    %172 = arith.truncf %171 : vector<16x64xf32> to vector<16x64xbf16>
    %cst_65 = arith.constant dense<0.000000e+00> : vector<8x64xf32>
    %173 = tpu.matmul %166, %172, %cst_65 {dimension_numbers = #tpu.dot_dimension_numbers<[1], [0], [0], [1], [0, 0, 1, 1], [], []>} : vector<8x16xbf16>, vector<16x64xbf16>, vector<8x64xf32> -> vector<8x64xf32>
    %174 = arith.truncf %173 : vector<8x64xf32> to vector<8x64xbf16>
    %cst_66 = arith.constant dense<0.000000e+00> : vector<8x32xf32>
    %175 = tpu.matmul %174, %167, %cst_66 {dimension_numbers = #tpu.dot_dimension_numbers<[1], [0], [0], [1], [0, 0, 1, 1], [], []>} : vector<8x64xbf16>, vector<64x32xbf16>, vector<8x32xf32> -> vector<8x32xf32>
    %176 = arith.mulf %175, %175 : vector<8x32xf32>
    %177 = tpu.concatenate %175, %176 in 1 : vector<8x32xf32>, vector<8x32xf32> -> vector<8x64xf32>
    %cst_67 = arith.constant dense<0.000000e+00> : vector<64xf32>
    %178 = vector.multi_reduction <add>, %177, %cst_67 [0] : vector<8x64xf32> to vector<64xf32>
    %179 = vector.shape_cast %178 : vector<64xf32> to vector<1x64xf32>
    %180 = vector.extract_strided_slice %179 {offsets = [0, 0], sizes = [1, 32], strides = [1, 1]} : vector<1x64xf32> to vector<1x32xf32>
    %181 = vector.extract_strided_slice %179 {offsets = [0, 32], sizes = [1, 32], strides = [1, 1]} : vector<1x64xf32> to vector<1x32xf32>
    %c24_i32 = arith.constant 24 : i32
    %182 = tpu.dynamic_rotate %180 by %c24_i32 dim 1 : vector<1x32xf32>, i32 -> vector<1x32xf32>
    %183 = arith.addf %180, %182 : vector<1x32xf32>
    %c24_i32_68 = arith.constant 24 : i32
    %184 = tpu.dynamic_rotate %181 by %c24_i32_68 dim 1 : vector<1x32xf32>, i32 -> vector<1x32xf32>
    %185 = arith.addf %181, %184 : vector<1x32xf32>
    %c16_i32 = arith.constant 16 : i32
    %186 = tpu.dynamic_rotate %183 by %c16_i32 dim 1 : vector<1x32xf32>, i32 -> vector<1x32xf32>
    %187 = arith.addf %183, %186 : vector<1x32xf32>
    %c16_i32_69 = arith.constant 16 : i32
    %188 = tpu.dynamic_rotate %185 by %c16_i32_69 dim 1 : vector<1x32xf32>, i32 -> vector<1x32xf32>
    %189 = arith.addf %185, %188 : vector<1x32xf32>
    %cst_70 = arith.constant 3.125000e-02 : f32
    %190 = vector.broadcast %cst_70 : f32 to vector<1x32xf32>
    %191 = arith.mulf %187, %190 : vector<1x32xf32>
    %cst_71 = arith.constant 3.125000e-02 : f32
    %192 = vector.broadcast %cst_71 : f32 to vector<1x32xf32>
    %193 = arith.mulf %189, %192 : vector<1x32xf32>
    %194 = arith.mulf %191, %191 : vector<1x32xf32>
    %195 = arith.subf %193, %194 : vector<1x32xf32>
    %cst_72 = arith.constant 0.000000e+00 : f32
    %196 = vector.broadcast %cst_72 : f32 to vector<1x32xf32>
    %197 = arith.maximumf %195, %196 : vector<1x32xf32>
    %cst_73 = arith.constant 9.99999974E-6 : f32
    %198 = vector.broadcast %cst_73 : f32 to vector<1x32xf32>
    %199 = arith.addf %197, %198 : vector<1x32xf32>
    %200 = math.rsqrt %199 : vector<1x32xf32>
    %201 = arith.mulf %139, %200 : vector<1x32xf32>
    %202 = arith.mulf %191, %201 : vector<1x32xf32>
    %203 = arith.subf %140, %202 : vector<1x32xf32>
    %204 = vector.broadcast %201 : vector<1x32xf32> to vector<8x32xf32>
    %205 = arith.mulf %175, %204 : vector<8x32xf32>
    %206 = vector.broadcast %203 : vector<1x32xf32> to vector<8x32xf32>
    %207 = arith.addf %205, %206 : vector<8x32xf32>
    %cst_74 = arith.constant 0.000000e+00 : f32
    %208 = vector.broadcast %cst_74 : f32 to vector<8x32xf32>
    %209 = arith.maximumf %207, %208 : vector<8x32xf32>
    %210 = arith.mulf %209, %209 : vector<8x32xf32>
    %211 = tpu.concatenate %209, %210 in 1 : vector<8x32xf32>, vector<8x32xf32> -> vector<8x64xf32>
    %cst_75 = arith.constant dense<0.000000e+00> : vector<64xf32>
    %212 = vector.multi_reduction <add>, %211, %cst_75 [0] : vector<8x64xf32> to vector<64xf32>
    %213 = vector.shape_cast %212 : vector<64xf32> to vector<1x64xf32>
    %214 = vector.extract_strided_slice %213 {offsets = [0, 0], sizes = [1, 32], strides = [1, 1]} : vector<1x64xf32> to vector<1x32xf32>
    %215 = vector.extract_strided_slice %213 {offsets = [0, 32], sizes = [1, 32], strides = [1, 1]} : vector<1x64xf32> to vector<1x32xf32>
    %c24_i32_76 = arith.constant 24 : i32
    %216 = tpu.dynamic_rotate %214 by %c24_i32_76 dim 1 : vector<1x32xf32>, i32 -> vector<1x32xf32>
    %217 = arith.addf %214, %216 : vector<1x32xf32>
    %c24_i32_77 = arith.constant 24 : i32
    %218 = tpu.dynamic_rotate %215 by %c24_i32_77 dim 1 : vector<1x32xf32>, i32 -> vector<1x32xf32>
    %219 = arith.addf %215, %218 : vector<1x32xf32>
    %c16_i32_78 = arith.constant 16 : i32
    %220 = tpu.dynamic_rotate %217 by %c16_i32_78 dim 1 : vector<1x32xf32>, i32 -> vector<1x32xf32>
    %221 = arith.addf %217, %220 : vector<1x32xf32>
    %c16_i32_79 = arith.constant 16 : i32
    %222 = tpu.dynamic_rotate %219 by %c16_i32_79 dim 1 : vector<1x32xf32>, i32 -> vector<1x32xf32>
    %223 = arith.addf %219, %222 : vector<1x32xf32>
    %cst_80 = arith.constant 3.125000e-02 : f32
    %224 = vector.broadcast %cst_80 : f32 to vector<1x32xf32>
    %225 = arith.mulf %221, %224 : vector<1x32xf32>
    %cst_81 = arith.constant 3.125000e-02 : f32
    %226 = vector.broadcast %cst_81 : f32 to vector<1x32xf32>
    %227 = arith.mulf %223, %226 : vector<1x32xf32>
    %228 = arith.mulf %225, %225 : vector<1x32xf32>
    %229 = arith.subf %227, %228 : vector<1x32xf32>
    %cst_82 = arith.constant 0.000000e+00 : f32
    %230 = vector.broadcast %cst_82 : f32 to vector<1x32xf32>
    %231 = arith.maximumf %229, %230 : vector<1x32xf32>
    %cst_83 = arith.constant 9.99999974E-6 : f32
    %232 = vector.broadcast %cst_83 : f32 to vector<1x32xf32>
    %233 = arith.addf %231, %232 : vector<1x32xf32>
    %234 = math.rsqrt %233 : vector<1x32xf32>
    %235 = arith.mulf %141, %234 : vector<1x32xf32>
    %236 = arith.mulf %225, %235 : vector<1x32xf32>
    %237 = arith.subf %142, %236 : vector<1x32xf32>
    %238 = vector.broadcast %235 : vector<1x32xf32> to vector<8x32xf32>
    %239 = arith.mulf %209, %238 : vector<8x32xf32>
    %240 = vector.broadcast %237 : vector<1x32xf32> to vector<8x32xf32>
    %241 = arith.addf %239, %240 : vector<8x32xf32>
    %c360 = arith.constant 360 : index
    %c0_84 = arith.constant 0 : index
    %242 = vector.load %arg1[%c360, %c0_84] : memref<536x384xbf16, #tpu.memory_space<vmem>>, vector<32x96xbf16>
    %243 = arith.truncf %241 : vector<8x32xf32> to vector<8x32xbf16>
    %cst_85 = arith.constant dense<0.000000e+00> : vector<8x96xf32>
    %244 = tpu.matmul %243, %242, %cst_85 {dimension_numbers = #tpu.dot_dimension_numbers<[1], [0], [0], [1], [0, 0, 1, 1], [], []>} : vector<8x32xbf16>, vector<32x96xbf16>, vector<8x96xf32> -> vector<8x96xf32>
    %245 = vector.extract_strided_slice %244 {offsets = [0, 32], sizes = [8, 32], strides = [1, 1]} : vector<8x96xf32> to vector<8x32xf32>
    %246 = vector.extract_strided_slice %244 {offsets = [0, 0], sizes = [8, 32], strides = [1, 1]} : vector<8x96xf32> to vector<8x32xf32>
    %c1_i32_86 = arith.constant 1 : i32
    %247 = tpu.dynamic_rotate %246 by %c1_i32_86 dim 0 : vector<8x32xf32>, i32 -> vector<8x32xf32>
    %248 = vector.extract_strided_slice %244 {offsets = [0, 64], sizes = [8, 32], strides = [1, 1]} : vector<8x96xf32> to vector<8x32xf32>
    %c7_i32_87 = arith.constant 7 : i32
    %249 = tpu.dynamic_rotate %248 by %c7_i32_87 dim 0 : vector<8x32xf32>, i32 -> vector<8x32xf32>
    %250 = tpu.iota {dimensions = array<i32: 0>} : vector<8x32xi32>
    %c3_i32 = arith.constant 3 : i32
    %251 = vector.broadcast %c3_i32 : i32 to vector<8x32xi32>
    %252 = arith.andi %250, %251 : vector<8x32xi32>
    %c0_i32_88 = arith.constant 0 : i32
    %253 = vector.broadcast %c0_i32_88 : i32 to vector<8x32xi32>
    %254 = arith.cmpi eq, %252, %253 : vector<8x32xi32>
    %cst_89 = arith.constant 0.000000e+00 : f32
    %255 = vector.broadcast %cst_89 : f32 to vector<8x32xf32>
    %256 = arith.select %254, %255, %247 : vector<8x32xi1>, vector<8x32xf32>
    %c3_i32_90 = arith.constant 3 : i32
    %257 = vector.broadcast %c3_i32_90 : i32 to vector<8x32xi32>
    %258 = arith.cmpi eq, %252, %257 : vector<8x32xi32>
    %cst_91 = arith.constant 0.000000e+00 : f32
    %259 = vector.broadcast %cst_91 : f32 to vector<8x32xf32>
    %260 = arith.select %258, %259, %249 : vector<8x32xi1>, vector<8x32xf32>
    %261 = arith.addf %245, %256 : vector<8x32xf32>
    %262 = arith.addf %261, %260 : vector<8x32xf32>
    %263 = vector.broadcast %138 : vector<1x32xf32> to vector<8x32xf32>
    %264 = arith.addf %262, %263 : vector<8x32xf32>
    %c16_92 = arith.constant 16 : index
    %c0_93 = arith.constant 0 : index
    %265 = vector.load %arg2[%c16_92, %c0_93] : memref<40x128xf32, #tpu.memory_space<vmem>>, vector<1x32xf32>
    %c17 = arith.constant 17 : index
    %c0_94 = arith.constant 0 : index
    %266 = vector.load %arg2[%c17, %c0_94] : memref<40x128xf32, #tpu.memory_space<vmem>>, vector<1x16xf32>
    %c18 = arith.constant 18 : index
    %c0_95 = arith.constant 0 : index
    %267 = vector.load %arg2[%c18, %c0_95] : memref<40x128xf32, #tpu.memory_space<vmem>>, vector<1x16xf32>
    %c19 = arith.constant 19 : index
    %c0_96 = arith.constant 0 : index
    %268 = vector.load %arg2[%c19, %c0_96] : memref<40x128xf32, #tpu.memory_space<vmem>>, vector<1x16xf32>
    %c20 = arith.constant 20 : index
    %c0_97 = arith.constant 0 : index
    %269 = vector.load %arg2[%c20, %c0_97] : memref<40x128xf32, #tpu.memory_space<vmem>>, vector<1x16xf32>
    %c21 = arith.constant 21 : index
    %c0_98 = arith.constant 0 : index
    %270 = vector.load %arg2[%c21, %c0_98] : memref<40x128xf32, #tpu.memory_space<vmem>>, vector<1x16xf32>
    %c392 = arith.constant 392 : index
    %c0_99 = arith.constant 0 : index
    %271 = vector.load %arg1[%c392, %c0_99] : memref<536x384xbf16, #tpu.memory_space<vmem>>, vector<32x96xbf16>
    %272 = arith.truncf %264 : vector<8x32xf32> to vector<8x32xbf16>
    %cst_100 = arith.constant dense<0.000000e+00> : vector<8x96xf32>
    %273 = tpu.matmul %272, %271, %cst_100 {dimension_numbers = #tpu.dot_dimension_numbers<[1], [0], [0], [1], [0, 0, 1, 1], [], []>} : vector<8x32xbf16>, vector<32x96xbf16>, vector<8x96xf32> -> vector<8x96xf32>
    %274 = vector.extract_strided_slice %273 {offsets = [0, 32], sizes = [8, 32], strides = [1, 1]} : vector<8x96xf32> to vector<8x32xf32>
    %275 = vector.extract_strided_slice %273 {offsets = [0, 0], sizes = [8, 32], strides = [1, 1]} : vector<8x96xf32> to vector<8x32xf32>
    %c1_i32_101 = arith.constant 1 : i32
    %276 = tpu.dynamic_rotate %275 by %c1_i32_101 dim 0 : vector<8x32xf32>, i32 -> vector<8x32xf32>
    %277 = vector.extract_strided_slice %273 {offsets = [0, 64], sizes = [8, 32], strides = [1, 1]} : vector<8x96xf32> to vector<8x32xf32>
    %c7_i32_102 = arith.constant 7 : i32
    %278 = tpu.dynamic_rotate %277 by %c7_i32_102 dim 0 : vector<8x32xf32>, i32 -> vector<8x32xf32>
    %279 = tpu.iota {dimensions = array<i32: 0>} : vector<8x32xi32>
    %c3_i32_103 = arith.constant 3 : i32
    %280 = vector.broadcast %c3_i32_103 : i32 to vector<8x32xi32>
    %281 = arith.andi %279, %280 : vector<8x32xi32>
    %c0_i32_104 = arith.constant 0 : i32
    %282 = vector.broadcast %c0_i32_104 : i32 to vector<8x32xi32>
    %283 = arith.cmpi eq, %281, %282 : vector<8x32xi32>
    %cst_105 = arith.constant 0.000000e+00 : f32
    %284 = vector.broadcast %cst_105 : f32 to vector<8x32xf32>
    %285 = arith.select %283, %284, %276 : vector<8x32xi1>, vector<8x32xf32>
    %c3_i32_106 = arith.constant 3 : i32
    %286 = vector.broadcast %c3_i32_106 : i32 to vector<8x32xi32>
    %287 = arith.cmpi eq, %281, %286 : vector<8x32xi32>
    %cst_107 = arith.constant 0.000000e+00 : f32
    %288 = vector.broadcast %cst_107 : f32 to vector<8x32xf32>
    %289 = arith.select %287, %288, %278 : vector<8x32xi1>, vector<8x32xf32>
    %290 = arith.addf %274, %285 : vector<8x32xf32>
    %291 = arith.addf %290, %289 : vector<8x32xf32>
    %292 = vector.broadcast %265 : vector<1x32xf32> to vector<8x32xf32>
    %293 = arith.addf %291, %292 : vector<8x32xf32>
    %c424 = arith.constant 424 : index
    %c0_108 = arith.constant 0 : index
    %294 = vector.load %arg1[%c424, %c0_108] : memref<536x384xbf16, #tpu.memory_space<vmem>>, vector<4x8xbf16>
    %c432 = arith.constant 432 : index
    %c0_109 = arith.constant 0 : index
    %295 = vector.load %arg1[%c432, %c0_109] : memref<536x384xbf16, #tpu.memory_space<vmem>>, vector<32x16xbf16>
    %c7_i32_110 = arith.constant 7 : i32
    %296 = tpu.dynamic_rotate %293 by %c7_i32_110 dim 0 : vector<8x32xf32>, i32 -> vector<8x32xf32>
    %297 = arith.maximumf %293, %296 : vector<8x32xf32>
    %c24_i32_111 = arith.constant 24 : i32
    %298 = tpu.dynamic_rotate %297 by %c24_i32_111 dim 1 : vector<8x32xf32>, i32 -> vector<8x32xf32>
    %299 = arith.maximumf %297, %298 : vector<8x32xf32>
    %300 = arith.truncf %299 : vector<8x32xf32> to vector<8x32xbf16>
    %cst_112 = arith.constant dense<0.000000e+00> : vector<4x32xf32>
    %301 = tpu.matmul %294, %300, %cst_112 {dimension_numbers = #tpu.dot_dimension_numbers<[1], [0], [0], [1], [0, 0, 1, 1], [], []>} : vector<4x8xbf16>, vector<8x32xbf16>, vector<4x32xf32> -> vector<4x32xf32>
    %302 = arith.truncf %301 : vector<4x32xf32> to vector<4x32xbf16>
    %cst_113 = arith.constant dense<0.000000e+00> : vector<4x16xf32>
    %303 = tpu.matmul %302, %295, %cst_113 {dimension_numbers = #tpu.dot_dimension_numbers<[1], [0], [0], [1], [0, 0, 1, 1], [], []>} : vector<4x32xbf16>, vector<32x16xbf16>, vector<4x16xf32> -> vector<4x16xf32>
    %304 = arith.mulf %303, %303 : vector<4x16xf32>
    %305 = tpu.concatenate %303, %304 in 1 : vector<4x16xf32>, vector<4x16xf32> -> vector<4x32xf32>
    %cst_114 = arith.constant dense<0.000000e+00> : vector<32xf32>
    %306 = vector.multi_reduction <add>, %305, %cst_114 [0] : vector<4x32xf32> to vector<32xf32>
    %307 = vector.shape_cast %306 : vector<32xf32> to vector<1x32xf32>
    %308 = vector.extract_strided_slice %307 {offsets = [0, 0], sizes = [1, 16], strides = [1, 1]} : vector<1x32xf32> to vector<1x16xf32>
    %309 = vector.extract_strided_slice %307 {offsets = [0, 16], sizes = [1, 16], strides = [1, 1]} : vector<1x32xf32> to vector<1x16xf32>
    %c8_i32 = arith.constant 8 : i32
    %310 = tpu.dynamic_rotate %308 by %c8_i32 dim 1 : vector<1x16xf32>, i32 -> vector<1x16xf32>
    %311 = arith.addf %308, %310 : vector<1x16xf32>
    %c8_i32_115 = arith.constant 8 : i32
    %312 = tpu.dynamic_rotate %309 by %c8_i32_115 dim 1 : vector<1x16xf32>, i32 -> vector<1x16xf32>
    %313 = arith.addf %309, %312 : vector<1x16xf32>
    %cst_116 = arith.constant 1.250000e-01 : f32
    %314 = vector.broadcast %cst_116 : f32 to vector<1x16xf32>
    %315 = arith.mulf %311, %314 : vector<1x16xf32>
    %cst_117 = arith.constant 1.250000e-01 : f32
    %316 = vector.broadcast %cst_117 : f32 to vector<1x16xf32>
    %317 = arith.mulf %313, %316 : vector<1x16xf32>
    %318 = arith.mulf %315, %315 : vector<1x16xf32>
    %319 = arith.subf %317, %318 : vector<1x16xf32>
    %cst_118 = arith.constant 0.000000e+00 : f32
    %320 = vector.broadcast %cst_118 : f32 to vector<1x16xf32>
    %321 = arith.maximumf %319, %320 : vector<1x16xf32>
    %cst_119 = arith.constant 9.99999974E-6 : f32
    %322 = vector.broadcast %cst_119 : f32 to vector<1x16xf32>
    %323 = arith.addf %321, %322 : vector<1x16xf32>
    %324 = math.rsqrt %323 : vector<1x16xf32>
    %325 = arith.mulf %267, %324 : vector<1x16xf32>
    %326 = arith.mulf %315, %325 : vector<1x16xf32>
    %327 = arith.subf %268, %326 : vector<1x16xf32>
    %328 = vector.broadcast %325 : vector<1x16xf32> to vector<4x16xf32>
    %329 = arith.mulf %303, %328 : vector<4x16xf32>
    %330 = vector.broadcast %327 : vector<1x16xf32> to vector<4x16xf32>
    %331 = arith.addf %329, %330 : vector<4x16xf32>
    %cst_120 = arith.constant 0.000000e+00 : f32
    %332 = vector.broadcast %cst_120 : f32 to vector<4x16xf32>
    %333 = arith.maximumf %331, %332 : vector<4x16xf32>
    %334 = arith.mulf %333, %333 : vector<4x16xf32>
    %335 = tpu.concatenate %333, %334 in 1 : vector<4x16xf32>, vector<4x16xf32> -> vector<4x32xf32>
    %cst_121 = arith.constant dense<0.000000e+00> : vector<32xf32>
    %336 = vector.multi_reduction <add>, %335, %cst_121 [0] : vector<4x32xf32> to vector<32xf32>
    %337 = vector.shape_cast %336 : vector<32xf32> to vector<1x32xf32>
    %338 = vector.extract_strided_slice %337 {offsets = [0, 0], sizes = [1, 16], strides = [1, 1]} : vector<1x32xf32> to vector<1x16xf32>
    %339 = vector.extract_strided_slice %337 {offsets = [0, 16], sizes = [1, 16], strides = [1, 1]} : vector<1x32xf32> to vector<1x16xf32>
    %c8_i32_122 = arith.constant 8 : i32
    %340 = tpu.dynamic_rotate %338 by %c8_i32_122 dim 1 : vector<1x16xf32>, i32 -> vector<1x16xf32>
    %341 = arith.addf %338, %340 : vector<1x16xf32>
    %c8_i32_123 = arith.constant 8 : i32
    %342 = tpu.dynamic_rotate %339 by %c8_i32_123 dim 1 : vector<1x16xf32>, i32 -> vector<1x16xf32>
    %343 = arith.addf %339, %342 : vector<1x16xf32>
    %cst_124 = arith.constant 1.250000e-01 : f32
    %344 = vector.broadcast %cst_124 : f32 to vector<1x16xf32>
    %345 = arith.mulf %341, %344 : vector<1x16xf32>
    %cst_125 = arith.constant 1.250000e-01 : f32
    %346 = vector.broadcast %cst_125 : f32 to vector<1x16xf32>
    %347 = arith.mulf %343, %346 : vector<1x16xf32>
    %348 = arith.mulf %345, %345 : vector<1x16xf32>
    %349 = arith.subf %347, %348 : vector<1x16xf32>
    %cst_126 = arith.constant 0.000000e+00 : f32
    %350 = vector.broadcast %cst_126 : f32 to vector<1x16xf32>
    %351 = arith.maximumf %349, %350 : vector<1x16xf32>
    %cst_127 = arith.constant 9.99999974E-6 : f32
    %352 = vector.broadcast %cst_127 : f32 to vector<1x16xf32>
    %353 = arith.addf %351, %352 : vector<1x16xf32>
    %354 = math.rsqrt %353 : vector<1x16xf32>
    %355 = arith.mulf %269, %354 : vector<1x16xf32>
    %356 = arith.mulf %345, %355 : vector<1x16xf32>
    %357 = arith.subf %270, %356 : vector<1x16xf32>
    %358 = vector.broadcast %355 : vector<1x16xf32> to vector<4x16xf32>
    %359 = arith.mulf %333, %358 : vector<4x16xf32>
    %360 = vector.broadcast %357 : vector<1x16xf32> to vector<4x16xf32>
    %361 = arith.addf %359, %360 : vector<4x16xf32>
    %c464 = arith.constant 464 : index
    %c0_128 = arith.constant 0 : index
    %362 = vector.load %arg1[%c464, %c0_128] : memref<536x384xbf16, #tpu.memory_space<vmem>>, vector<16x48xbf16>
    %363 = arith.truncf %361 : vector<4x16xf32> to vector<4x16xbf16>
    %cst_129 = arith.constant dense<0.000000e+00> : vector<4x48xf32>
    %364 = tpu.matmul %363, %362, %cst_129 {dimension_numbers = #tpu.dot_dimension_numbers<[1], [0], [0], [1], [0, 0, 1, 1], [], []>} : vector<4x16xbf16>, vector<16x48xbf16>, vector<4x48xf32> -> vector<4x48xf32>
    %365 = vector.extract_strided_slice %364 {offsets = [0, 16], sizes = [4, 16], strides = [1, 1]} : vector<4x48xf32> to vector<4x16xf32>
    %366 = vector.extract_strided_slice %364 {offsets = [0, 0], sizes = [4, 16], strides = [1, 1]} : vector<4x48xf32> to vector<4x16xf32>
    %c1_i32_130 = arith.constant 1 : i32
    %367 = tpu.dynamic_rotate %366 by %c1_i32_130 dim 0 : vector<4x16xf32>, i32 -> vector<4x16xf32>
    %368 = vector.extract_strided_slice %364 {offsets = [0, 32], sizes = [4, 16], strides = [1, 1]} : vector<4x48xf32> to vector<4x16xf32>
    %c3_i32_131 = arith.constant 3 : i32
    %369 = tpu.dynamic_rotate %368 by %c3_i32_131 dim 0 : vector<4x16xf32>, i32 -> vector<4x16xf32>
    %370 = tpu.iota {dimensions = array<i32: 0>} : vector<4x16xi32>
    %c1_i32_132 = arith.constant 1 : i32
    %371 = vector.broadcast %c1_i32_132 : i32 to vector<4x16xi32>
    %372 = arith.andi %370, %371 : vector<4x16xi32>
    %c0_i32_133 = arith.constant 0 : i32
    %373 = vector.broadcast %c0_i32_133 : i32 to vector<4x16xi32>
    %374 = arith.cmpi eq, %372, %373 : vector<4x16xi32>
    %cst_134 = arith.constant 0.000000e+00 : f32
    %375 = vector.broadcast %cst_134 : f32 to vector<4x16xf32>
    %376 = arith.select %374, %375, %367 : vector<4x16xi1>, vector<4x16xf32>
    %c1_i32_135 = arith.constant 1 : i32
    %377 = vector.broadcast %c1_i32_135 : i32 to vector<4x16xi32>
    %378 = arith.cmpi eq, %372, %377 : vector<4x16xi32>
    %cst_136 = arith.constant 0.000000e+00 : f32
    %379 = vector.broadcast %cst_136 : f32 to vector<4x16xf32>
    %380 = arith.select %378, %379, %369 : vector<4x16xi1>, vector<4x16xf32>
    %381 = arith.addf %365, %376 : vector<4x16xf32>
    %382 = arith.addf %381, %380 : vector<4x16xf32>
    %383 = vector.broadcast %266 : vector<1x16xf32> to vector<4x16xf32>
    %384 = arith.addf %382, %383 : vector<4x16xf32>
    %c24 = arith.constant 24 : index
    %c0_137 = arith.constant 0 : index
    %385 = vector.load %arg2[%c24, %c0_137] : memref<40x128xf32, #tpu.memory_space<vmem>>, vector<1x16xf32>
    %c25 = arith.constant 25 : index
    %c0_138 = arith.constant 0 : index
    %386 = vector.load %arg2[%c25, %c0_138] : memref<40x128xf32, #tpu.memory_space<vmem>>, vector<1x8xf32>
    %c26 = arith.constant 26 : index
    %c0_139 = arith.constant 0 : index
    %387 = vector.load %arg2[%c26, %c0_139] : memref<40x128xf32, #tpu.memory_space<vmem>>, vector<1x8xf32>
    %c27 = arith.constant 27 : index
    %c0_140 = arith.constant 0 : index
    %388 = vector.load %arg2[%c27, %c0_140] : memref<40x128xf32, #tpu.memory_space<vmem>>, vector<1x8xf32>
    %c28 = arith.constant 28 : index
    %c0_141 = arith.constant 0 : index
    %389 = vector.load %arg2[%c28, %c0_141] : memref<40x128xf32, #tpu.memory_space<vmem>>, vector<1x8xf32>
    %c29 = arith.constant 29 : index
    %c0_142 = arith.constant 0 : index
    %390 = vector.load %arg2[%c29, %c0_142] : memref<40x128xf32, #tpu.memory_space<vmem>>, vector<1x8xf32>
    %c480 = arith.constant 480 : index
    %c0_143 = arith.constant 0 : index
    %391 = vector.load %arg1[%c480, %c0_143] : memref<536x384xbf16, #tpu.memory_space<vmem>>, vector<16x48xbf16>
    %392 = arith.truncf %384 : vector<4x16xf32> to vector<4x16xbf16>
    %cst_144 = arith.constant dense<0.000000e+00> : vector<4x48xf32>
    %393 = tpu.matmul %392, %391, %cst_144 {dimension_numbers = #tpu.dot_dimension_numbers<[1], [0], [0], [1], [0, 0, 1, 1], [], []>} : vector<4x16xbf16>, vector<16x48xbf16>, vector<4x48xf32> -> vector<4x48xf32>
    %394 = vector.extract_strided_slice %393 {offsets = [0, 16], sizes = [4, 16], strides = [1, 1]} : vector<4x48xf32> to vector<4x16xf32>
    %395 = vector.extract_strided_slice %393 {offsets = [0, 0], sizes = [4, 16], strides = [1, 1]} : vector<4x48xf32> to vector<4x16xf32>
    %c1_i32_145 = arith.constant 1 : i32
    %396 = tpu.dynamic_rotate %395 by %c1_i32_145 dim 0 : vector<4x16xf32>, i32 -> vector<4x16xf32>
    %397 = vector.extract_strided_slice %393 {offsets = [0, 32], sizes = [4, 16], strides = [1, 1]} : vector<4x48xf32> to vector<4x16xf32>
    %c3_i32_146 = arith.constant 3 : i32
    %398 = tpu.dynamic_rotate %397 by %c3_i32_146 dim 0 : vector<4x16xf32>, i32 -> vector<4x16xf32>
    %399 = tpu.iota {dimensions = array<i32: 0>} : vector<4x16xi32>
    %c1_i32_147 = arith.constant 1 : i32
    %400 = vector.broadcast %c1_i32_147 : i32 to vector<4x16xi32>
    %401 = arith.andi %399, %400 : vector<4x16xi32>
    %c0_i32_148 = arith.constant 0 : i32
    %402 = vector.broadcast %c0_i32_148 : i32 to vector<4x16xi32>
    %403 = arith.cmpi eq, %401, %402 : vector<4x16xi32>
    %cst_149 = arith.constant 0.000000e+00 : f32
    %404 = vector.broadcast %cst_149 : f32 to vector<4x16xf32>
    %405 = arith.select %403, %404, %396 : vector<4x16xi1>, vector<4x16xf32>
    %c1_i32_150 = arith.constant 1 : i32
    %406 = vector.broadcast %c1_i32_150 : i32 to vector<4x16xi32>
    %407 = arith.cmpi eq, %401, %406 : vector<4x16xi32>
    %cst_151 = arith.constant 0.000000e+00 : f32
    %408 = vector.broadcast %cst_151 : f32 to vector<4x16xf32>
    %409 = arith.select %407, %408, %398 : vector<4x16xi1>, vector<4x16xf32>
    %410 = arith.addf %394, %405 : vector<4x16xf32>
    %411 = arith.addf %410, %409 : vector<4x16xf32>
    %412 = vector.broadcast %385 : vector<1x16xf32> to vector<4x16xf32>
    %413 = arith.addf %411, %412 : vector<4x16xf32>
    %c496 = arith.constant 496 : index
    %c0_152 = arith.constant 0 : index
    %414 = vector.load %arg1[%c496, %c0_152] : memref<536x384xbf16, #tpu.memory_space<vmem>>, vector<2x4xbf16>
    %c504 = arith.constant 504 : index
    %c0_153 = arith.constant 0 : index
    %415 = vector.load %arg1[%c504, %c0_153] : memref<536x384xbf16, #tpu.memory_space<vmem>>, vector<16x8xbf16>
    %c3_i32_154 = arith.constant 3 : i32
    %416 = tpu.dynamic_rotate %413 by %c3_i32_154 dim 0 : vector<4x16xf32>, i32 -> vector<4x16xf32>
    %417 = arith.maximumf %413, %416 : vector<4x16xf32>
    %c8_i32_155 = arith.constant 8 : i32
    %418 = tpu.dynamic_rotate %417 by %c8_i32_155 dim 1 : vector<4x16xf32>, i32 -> vector<4x16xf32>
    %419 = arith.maximumf %417, %418 : vector<4x16xf32>
    %420 = arith.truncf %419 : vector<4x16xf32> to vector<4x16xbf16>
    %cst_156 = arith.constant dense<0.000000e+00> : vector<2x16xf32>
    %421 = tpu.matmul %414, %420, %cst_156 {dimension_numbers = #tpu.dot_dimension_numbers<[1], [0], [0], [1], [0, 0, 1, 1], [], []>} : vector<2x4xbf16>, vector<4x16xbf16>, vector<2x16xf32> -> vector<2x16xf32>
    %422 = arith.truncf %421 : vector<2x16xf32> to vector<2x16xbf16>
    %cst_157 = arith.constant dense<0.000000e+00> : vector<2x8xf32>
    %423 = tpu.matmul %422, %415, %cst_157 {dimension_numbers = #tpu.dot_dimension_numbers<[1], [0], [0], [1], [0, 0, 1, 1], [], []>} : vector<2x16xbf16>, vector<16x8xbf16>, vector<2x8xf32> -> vector<2x8xf32>
    %424 = arith.mulf %423, %423 : vector<2x8xf32>
    %425 = tpu.concatenate %423, %424 in 1 : vector<2x8xf32>, vector<2x8xf32> -> vector<2x16xf32>
    %cst_158 = arith.constant dense<0.000000e+00> : vector<16xf32>
    %426 = vector.multi_reduction <add>, %425, %cst_158 [0] : vector<2x16xf32> to vector<16xf32>
    %427 = vector.shape_cast %426 : vector<16xf32> to vector<1x16xf32>
    %428 = vector.extract_strided_slice %427 {offsets = [0, 0], sizes = [1, 8], strides = [1, 1]} : vector<1x16xf32> to vector<1x8xf32>
    %429 = vector.extract_strided_slice %427 {offsets = [0, 8], sizes = [1, 8], strides = [1, 1]} : vector<1x16xf32> to vector<1x8xf32>
    %cst_159 = arith.constant 5.000000e-01 : f32
    %430 = vector.broadcast %cst_159 : f32 to vector<1x8xf32>
    %431 = arith.mulf %428, %430 : vector<1x8xf32>
    %cst_160 = arith.constant 5.000000e-01 : f32
    %432 = vector.broadcast %cst_160 : f32 to vector<1x8xf32>
    %433 = arith.mulf %429, %432 : vector<1x8xf32>
    %434 = arith.mulf %431, %431 : vector<1x8xf32>
    %435 = arith.subf %433, %434 : vector<1x8xf32>
    %cst_161 = arith.constant 0.000000e+00 : f32
    %436 = vector.broadcast %cst_161 : f32 to vector<1x8xf32>
    %437 = arith.maximumf %435, %436 : vector<1x8xf32>
    %cst_162 = arith.constant 9.99999974E-6 : f32
    %438 = vector.broadcast %cst_162 : f32 to vector<1x8xf32>
    %439 = arith.addf %437, %438 : vector<1x8xf32>
    %440 = math.rsqrt %439 : vector<1x8xf32>
    %441 = arith.mulf %387, %440 : vector<1x8xf32>
    %442 = arith.mulf %431, %441 : vector<1x8xf32>
    %443 = arith.subf %388, %442 : vector<1x8xf32>
    %444 = vector.broadcast %441 : vector<1x8xf32> to vector<2x8xf32>
    %445 = arith.mulf %423, %444 : vector<2x8xf32>
    %446 = vector.broadcast %443 : vector<1x8xf32> to vector<2x8xf32>
    %447 = arith.addf %445, %446 : vector<2x8xf32>
    %cst_163 = arith.constant 0.000000e+00 : f32
    %448 = vector.broadcast %cst_163 : f32 to vector<2x8xf32>
    %449 = arith.maximumf %447, %448 : vector<2x8xf32>
    %450 = arith.mulf %449, %449 : vector<2x8xf32>
    %451 = tpu.concatenate %449, %450 in 1 : vector<2x8xf32>, vector<2x8xf32> -> vector<2x16xf32>
    %cst_164 = arith.constant dense<0.000000e+00> : vector<16xf32>
    %452 = vector.multi_reduction <add>, %451, %cst_164 [0] : vector<2x16xf32> to vector<16xf32>
    %453 = vector.shape_cast %452 : vector<16xf32> to vector<1x16xf32>
    %454 = vector.extract_strided_slice %453 {offsets = [0, 0], sizes = [1, 8], strides = [1, 1]} : vector<1x16xf32> to vector<1x8xf32>
    %455 = vector.extract_strided_slice %453 {offsets = [0, 8], sizes = [1, 8], strides = [1, 1]} : vector<1x16xf32> to vector<1x8xf32>
    %cst_165 = arith.constant 5.000000e-01 : f32
    %456 = vector.broadcast %cst_165 : f32 to vector<1x8xf32>
    %457 = arith.mulf %454, %456 : vector<1x8xf32>
    %cst_166 = arith.constant 5.000000e-01 : f32
    %458 = vector.broadcast %cst_166 : f32 to vector<1x8xf32>
    %459 = arith.mulf %455, %458 : vector<1x8xf32>
    %460 = arith.mulf %457, %457 : vector<1x8xf32>
    %461 = arith.subf %459, %460 : vector<1x8xf32>
    %cst_167 = arith.constant 0.000000e+00 : f32
    %462 = vector.broadcast %cst_167 : f32 to vector<1x8xf32>
    %463 = arith.maximumf %461, %462 : vector<1x8xf32>
    %cst_168 = arith.constant 9.99999974E-6 : f32
    %464 = vector.broadcast %cst_168 : f32 to vector<1x8xf32>
    %465 = arith.addf %463, %464 : vector<1x8xf32>
    %466 = math.rsqrt %465 : vector<1x8xf32>
    %467 = arith.mulf %389, %466 : vector<1x8xf32>
    %468 = arith.mulf %457, %467 : vector<1x8xf32>
    %469 = arith.subf %390, %468 : vector<1x8xf32>
    %470 = vector.broadcast %467 : vector<1x8xf32> to vector<2x8xf32>
    %471 = arith.mulf %449, %470 : vector<2x8xf32>
    %472 = vector.broadcast %469 : vector<1x8xf32> to vector<2x8xf32>
    %473 = arith.addf %471, %472 : vector<2x8xf32>
    %c520 = arith.constant 520 : index
    %c0_169 = arith.constant 0 : index
    %474 = vector.load %arg1[%c520, %c0_169] : memref<536x384xbf16, #tpu.memory_space<vmem>>, vector<8x8xbf16>
    %475 = arith.truncf %473 : vector<2x8xf32> to vector<2x8xbf16>
    %cst_170 = arith.constant dense<0.000000e+00> : vector<2x8xf32>
    %476 = tpu.matmul %475, %474, %cst_170 {dimension_numbers = #tpu.dot_dimension_numbers<[1], [0], [0], [1], [0, 0, 1, 1], [], []>} : vector<2x8xbf16>, vector<8x8xbf16>, vector<2x8xf32> -> vector<2x8xf32>
    %477 = vector.broadcast %386 : vector<1x8xf32> to vector<2x8xf32>
    %478 = arith.addf %476, %477 : vector<2x8xf32>
    %c528 = arith.constant 528 : index
    %c0_171 = arith.constant 0 : index
    %479 = vector.load %arg1[%c528, %c0_171] : memref<536x384xbf16, #tpu.memory_space<vmem>>, vector<8x5xbf16>
    %480 = arith.truncf %478 : vector<2x8xf32> to vector<2x8xbf16>
    %cst_172 = arith.constant dense<0.000000e+00> : vector<2x5xf32>
    %481 = tpu.matmul %480, %479, %cst_172 {dimension_numbers = #tpu.dot_dimension_numbers<[1], [0], [0], [1], [0, 0, 1, 1], [], []>} : vector<2x8xbf16>, vector<8x5xbf16>, vector<2x5xf32> -> vector<2x5xf32>
    %c32_173 = arith.constant 32 : index
    %c0_174 = arith.constant 0 : index
    %482 = vector.load %arg2[%c32_173, %c0_174] : memref<40x128xf32, #tpu.memory_space<vmem>>, vector<1x5xf32>
    %483 = vector.broadcast %482 : vector<1x5xf32> to vector<2x5xf32>
    %484 = arith.addf %481, %483 : vector<2x5xf32>
    %c0_175 = arith.constant 0 : index
    %c0_176 = arith.constant 0 : index
    %485 = vector.load %arg3[%c0_175, %c0_176] : memref<2x5xf32, #tpu.memory_space<vmem>>, vector<2x5xf32>
    tpu.vector_store %arg3[%c0_175, %c0_176], %484 {strides = array<i32>} : memref<2x5xf32, #tpu.memory_space<vmem>>, vector<2x5xf32>,
    return
  }
}

</mosaic_0001>

<bundles_post_ra>
// kernel: warped_omniconv_forward.1
= control target key start
LH: loop header
LB: loop body
LE: loop exit
PB: predicated region body
PF: predicated region fallthrough
CT: control target
= control target key end

     0   :  { %8 = vsyncpa [#allocation3], 0  ;;  %s3355_s0 = inlined_call_operand.hbm [shape: f32[32,16], index: 0, kind: input, shape index: {}]   ;;  %s3356_s1 = inlined_call_operand.hbm [shape: bf16[536,384], index: 1, kind: input, shape index: {}]   ;;  %s3357_s2 = inlined_call_operand.hbm [shape: f32[40,128], index: 2, kind: input, shape index: {}]   ;;  %s3358_s3 = inlined_call_operand.hbm [shape: f32[2,5], index: 3, kind: output, shape index: {}]  }
   0x1   :  { %9 = vsyncpa [#allocation6], 0 }
   0x2   :  { %10 = vsyncpa [#allocation4], 0  ;;  %s2792_s12 = smov [#allocation5]  }
   0x3   :  { %s28_s13 = sshll.u32 %s2792_s12, 4  ;;  %s29_s13 = int_to_ptr.vmem [resolvable:$true] %s28_s13 }
   0x4   :  { %s2714_s14 = scalar_lea.vmem %s29_s13, 12864  ;;  %p2719_p1 = scmp.lt.s32.totalorder %s29_s13, %s29_s13 }
   0x5   :  { %p2715_p0 = scmp.ne.s32.totalorder %s29_s13, %s2714_s14  ;;  %p2720_p2 = scmp.lt.s32.totalorder %s2714_s14, %s2714_s14 }
   0x7   :  { %p2721_p3 = por %p2720_p2, %p2719_p1 }
   0x9   :  { %p2722_p4 = pnand %p2721_p3, %p2715_p0 }
   0xb   :  { %2725 = shalt.err (!%p2722_p4)
}
   0xc   :  { %s2793_s15 = smov 192   ;;  %s2794_s16 = smov 12  }
   0xd   :  { %34 = dma.hbm_to_vmem [thread:$0]  %s3356_s1, 12864, %s29_s13, [#allocation6], %s2793_s15, %s2793_s15, %s2794_s16  }
   0xe   :  { %s2795_s19 = smov [#allocation2]  }
   0xf   :  { %s16_s20 = sshll.u32 %s2795_s19, 4  ;;  %s17_s20 = int_to_ptr.vmem [resolvable:$true] %s16_s20 }
  0x10   :  { %s2734_s21 = scalar_lea.vmem %s17_s20, 512  ;;  %p2739_p6 = scmp.lt.s32.totalorder %s17_s20, %s17_s20 }
  0x11   :  { %p2735_p5 = scmp.ne.s32.totalorder %s17_s20, %s2734_s21  ;;  %p2740_p7 = scmp.lt.s32.totalorder %s2734_s21, %s2734_s21 }
  0x13   :  { %p2741_p8 = por %p2740_p7, %p2739_p6 }
  0x15   :  { %p2742_p9 = pnand %p2741_p8, %p2735_p5 }
  0x17   :  { %2745 = shalt.err (!%p2742_p9)
}
  0x18   :  { %s2796_s22 = smov 128   ;;  %s2797_s23 = smov 8  }
  0x19   :  { %22 = dma.hbm_to_vmem [thread:$0]  %s3355_s0, 512, %s17_s20, [#allocation3], %s2796_s22, %s2796_s22, %s2797_s23  }
  0x1a   :  { %s2798_s26 = smov [#allocation7]  }
  0x1b   :  { %s40_s27 = sshll.u32 %s2798_s26, 4  ;;  %s41_s27 = int_to_ptr.vmem [resolvable:$true] %s40_s27 }
  0x1c   :  { %s2754_s1 = scalar_lea.vmem %s41_s27, 640  ;;  %p2759_p11 = scmp.lt.s32.totalorder %s41_s27, %s41_s27 }
  0x1d   :  { %p2755_p10 = scmp.ne.s32.totalorder %s41_s27, %s2754_s1  ;;  %p2760_p12 = scmp.lt.s32.totalorder %s2754_s1, %s2754_s1 }
  0x1f   :  { %p2761_p13 = por %p2760_p12, %p2759_p11 }
  0x21   :  { %p2762_p0 = pnand %p2761_p13, %p2755_p10 }
  0x23   :  { %2765 = shalt.err (!%p2762_p0)
}
  0x24   :  { %46 = dma.hbm_to_vmem [thread:$0]  %s3357_s2, 640, %s41_s27, [#allocation6], %s2796_s22, %s2796_s22, %s2797_s23  }
  0x25   :  { %2786 = dma.done.wait [#allocation3], 512  }
  0x26   :  { %2787 = vsyncadd [#allocation3], 4294966784 }
  0x27   :  { %2788 = dma.done.wait [#allocation6], 13504  }
  0x28   :  { %2789 = vsyncadd [#allocation6], 4294953792  ;;  %v2799_v0 = vmov 0   ;;  %v2640_v1 = vld [vmem:[#allocation5 + $0x4] ss:$12 sps:$4 sm:$0xff]   ;;  %v58_v5 = vld [vmem:[#allocation2 + $0x8] sm:$0xff]  ;;  %v202_v10 = vlaneseq }
  0x29   :  { %128 = vmatprep.mubr.bf16.mxu0 %v2799_v0  ;;  %v2642_v2 = vld [vmem:[#allocation5 + $0x8] ss:$12 sps:$4 sm:$0xff]   ;;  %110 = vmatprep.subr.bf16.mxu0 %v2640_v1  ;;  %v2643_v3 = vld [vmem:[#allocation5] ss:$12 sps:$4 sm:$0xff]   ;;  %vm89_vm0 = vcmask 130048   ;;  %v60_v8 = vld [vmem:[#allocation2 + $0x18] sm:$0xff] }
  0x2a   :  { %v57_v4 = vld [vmem:[#allocation2] sm:$0xff]  ;;  %2462 = vmatprep.subr.bf16.mxu1 %v2642_v2  ;;  %v59_v7 = vld [vmem:[#allocation2 + $0x10] sm:$0xff]  ;;  %111 = vmatpush1.bf16.msra.mxu0 %v2643_v3  ;;  %v2849_v11 = vshrl.u32 %v202_v10, 7  ;;  %vm2801_vm7 = vmmov 0   ;;  %s2802_s0 = smov 120   ;;  %vm306_vm8 = vcmask 261120  }
  0x2b   :  { %v71_v6 = vpack.c.bf16 %v58_v5, %v57_v4  ;;  %2463 = vmatpush3.bf16.msra.mxu1 %v2642_v2  ;;  %v72_v9 = vpack.c.bf16 %v60_v8, %v59_v7  ;;  %v2355_v53 = vld [vmem:[#allocation7] ss:$0 sm:$0xff]  ;;  %v2800_v4 = vmov 0.0   ;;  %s2803_s2 = smov 64   ;;  %vm451_vm9 = vcmask 523264   ;;  %s2804_s30 = smov 56  }
  0x2c   :  { %v2852_v14 = vadd.s32 8, %v2849_v11  ;;  %v219_v15 = vadd.s32 16, %v2849_v11  ;;  %vm204_vm1 = vcmp.lt.s32.totalorder %v2849_v11, 1  ;;  %vm213_vm2 = vcmp.lt.s32.totalorder %v2849_v11, 7  ;;  %2468 = vmatprep.subr.bf16.mxu1 %v2800_v4  ;;  %2476 = vmatprep.subr.bf16.mxu0 %v2800_v4  ;;  %s2805_s4 = smov 112   ;;  %s2806_s5 = smov 48  }
  0x2d   :  { %2464 = vmatprep.mubr.msk.bf16.mxu1 %vm89_vm0, %v71_v6  ;;  %2351 = vmatmul.mubr.msk.bf16.vlgmr.msra.gmra.mxu0 %vm89_vm0, %v71_v6  ;;  %v220_v27 = vadd.s32 24, %v2849_v11  ;;  %v221_v34 = vand.u32 15, %v2849_v11  ;;  %vm461_vm10 = vcmask 1048064   ;;  %s2807_s6 = smov 96   ;;  %s2808_s7 = smov 32   ;;  %vm1178_vm15 = vcmask 1047808  }
  0x2e   :  { %2465 = vmatmul.mubr.msk.bf16.vlgmr.msra.gmra.mxu1 %vm89_vm0, %v72_v9  ;;  %138 = vmatprep.mubr.bf16.mxu0 %v2799_v0  ;;  %v222_v20 = vand.u32 15, %v2852_v14  ;;  %v223_v23 = vand.u32 15, %v219_v15  ;;  %s2809_s8 = smov 24   ;;  %s2810_s9 = smov 16  }
  0x2f   :  { %v224_v38 = vand.u32 15, %v220_v27  ;;  %vm225_vm5 = vcmp.eq.s32.totalorder %v221_v34, 0  ;;  %2472 = vmatprep.mubr.msk.bf16.mxu1 %vm2801_vm7, %v2800_v4  ;;  %s2811_s10 = smov [#allocation8]  }
  0x30   :  { %vm2861_vm3 = vcmp.eq.s32.totalorder %v222_v20, 15  ;;  %vm227_vm4 = vcmp.eq.s32.totalorder %v223_v23, 0  ;;  %v2646_v20 = vld [vmem:[#allocation5 + $0xc0] ss:$12 sps:$4 sm:$0xff]   ;;  %v2649_v23 = vld [vmem:[#allocation5 + $0x78] ss:$12 sps:$4 sm:$0xff]  }
  0x31   :  { %vm236_vm6 = vcmp.eq.s32.totalorder %v224_v38, 15  ;;  %v2651_v38 = vld [vmem:[#allocation5 + $0x48] ss:$12 sps:$4 sm:$0xff]   ;;  %s2338_s11 = sshll.u32 %s2811_s10, 4  ;;  %s2339_s11 = int_to_ptr.vmem [resolvable:$true] %s2338_s11 }
  0x32   :  { %s2766_s12 = scalar_lea.vmem %s2339_s11, 32  ;;  %p2771_p2 = scmp.lt.s32.totalorder %s2339_s11, %s2339_s11 }
  0x33   :  { %p2767_p1 = scmp.ne.s32.totalorder %s2339_s11, %s2766_s12  ;;  %p2772_p3 = scmp.lt.s32.totalorder %s2766_s12, %s2766_s12 }
  0x35   :  { %2352 = vmatmul.mubr.msk.bf16.gmra.mxu0 %vm89_vm0, %v72_v9  ;;  %p2773_p4 = por %p2772_p3, %p2771_p2 }
  0x36   :  { %2492 = vmatprep.mubr.msk.bf16.mxu0 %vm2801_vm7, %v2800_v4 }
  0x37   :  { %p2774_p5 = pnand %p2773_p4, %p2767_p1 }
  0xed   :  { %v130_v12 = vpop.f32.mrf.mxu0 }
  0xee   :  { %v2466_v13 = vpop.f32.mrf.mxu1  ;;  %v198_v24 = vrot.slane %v130_v12, 7 }
  0xef   :  { %v132_v16 = vpop.f32.mrf.mxu0  ;;  %v211_v21 = vrot.slane %v2466_v13, 1 }
  0xf0   :  { %v183_v17 = vpop.f32.mrf.mxu1 }
  0xf1   :  { %v134_v18 = vpop.f32.mrf.mxu0  ;;  %v209_v35 = vrot.slane %v183_v17, 1 }
  0xf2   :  { %v2467_v19 = vpop.f32.mrf.mxu1  ;;  %v199_v22 = vrot.slane %v134_v18, 7  ;;  %v2645_v18 = vld [vmem:[#allocation5 + $0xd8] ss:$12 sps:$4 sm:$0xff]  }
  0xf3   :  { %v136_v25 = vpop.f32.mrf.mxu0  ;;  %v212_v36 = vrot.slane %v2467_v19, 1  ;;  %2477 = vmatpush3.bf16.msra.mxu0 %v2645_v18 }
  0xf4   :  { %v186_v26 = vpop.f32.mrf.mxu1  ;;  %v207_v29 = vsel %vm204_vm1, %v198_v24, %v199_v22  ;;  %2478 = vmatprep.subr.bf16.mxu0 %v2800_v4 }
  0xf5   :  { %v210_v28 = vrot.slane %v186_v26, 1  ;;  %v140_v31 = vpop.f32.mrf.mxu0  ;;  %v242_v39 = vadd.f32 %v207_v29, %v136_v25  ;;  %v214_v46 = vsel %vm213_vm2, %v211_v21, %v212_v36  ;;  %v217_v48 = vsel %vm213_vm2, %v212_v36, %v209_v35 }
  0xf6   :  { %v200_v33 = vrot.slane %v140_v31, 7  ;;  %v240_v57 = vsel %vm236_vm6, 0.0, %v217_v48  ;;  %vm1691_vm6 = vcmask 1047680  }
  0xf7   :  { %v215_v32 = vsel %vm213_vm2, %v210_v28, %v211_v21  ;;  %v142_v37 = vpop.f32.mrf.mxu0  ;;  %v216_v58 = vsel %vm213_vm2, %v209_v35, %v210_v28  ;;  %2479 = vmatpush3.bf16.msra.mxu0 %v2646_v20  ;;  %v2647_v21 = vld [vmem:[#allocation5 + $0xa8] ss:$12 sps:$4 sm:$0xff]  }
  0xf8   :  { %v206_v40 = vsel %vm204_vm1, %v199_v22, %v200_v33  ;;  %v238_v41 = vsel %vm2861_vm3, 0.0, %v215_v32  ;;  %2480 = vmatprep.subr.bf16.mxu0 %v2800_v4  ;;  %v2648_v22 = vld [vmem:[#allocation5 + $0x90] ss:$12 sps:$4 sm:$0xff]   ;;  %vm1577_vm3 = vcmask 1043456  }
  0xf9   :  { %v231_v42 = vsel %vm227_vm4, 0.0, %v206_v40  ;;  %v144_v43 = vpop.f32.mrf.mxu0  ;;  %v246_v49 = vadd.f32 %v242_v39, %v238_v41  ;;  %v2652_v39 = vld [vmem:[#allocation5 + $0x30] ss:$12 sps:$4 sm:$0xff]   ;;  %vm1573_vm4 = vcmask 64512  }
  0xfa   :  { %v243_v44 = vadd.f32 %v231_v42, %v142_v37  ;;  %v201_v45 = vrot.slane %v144_v43, 7  ;;  %v2644_v37 = vld [vmem:[#allocation5 + $0x18] ss:$12 sps:$4 sm:$0xff]  }
  0xfb   :  { %v146_v47 = vpop.f32.mrf.mxu0  ;;  %v254_v62 = vadd.f32 %v2355_v53, %v246_v49  ;;  %2481 = vmatpush3.bf16.msra.mxu0 %v2647_v21 }
  0xfc   :  { %v247_v50 = vadd.f32 %v243_v44, %v214_v46  ;;  %v208_v51 = vsel %vm204_vm1, %v201_v45, %v198_v24  ;;  %v205_v52 = vsel %vm204_vm1, %v200_v33, %v201_v45  ;;  %2482 = vmatprep.subr.bf16.mxu0 %v2800_v4  ;;  %v2650_v24 = vld [vmem:[#allocation5 + $0x60] ss:$12 sps:$4 sm:$0xff]  }
  0xfd   :  { %v229_v54 = vsel %vm225_vm5, 0.0, %v208_v51  ;;  %v244_v55 = vadd.f32 %v205_v52, %v146_v47  ;;  %v276_v6 = vrot.slane %v254_v62, 1  ;;  %vm1683_vm5 = vcmask 257024  }
  0xfe   :  { %v241_v56 = vadd.f32 %v229_v54, %v132_v16  ;;  %v255_v59 = vadd.f32 %v2355_v53, %v247_v50 }
  0xff   :  { %v248_v60 = vadd.f32 %v244_v55, %v240_v57  ;;  %2483 = vmatpush3.bf16.msra.mxu0 %v2648_v22 }
 0x100   :  { %v245_v61 = vadd.f32 %v241_v56, %v216_v58  ;;  %v277_v2 = vrot.slane %v255_v59, 1  ;;  %2484 = vmatprep.subr.bf16.mxu0 %v2800_v4 }
 0x101   :  { %v256_v63 = vadd.f32 %v2355_v53, %v248_v60 }
 0x102   :  { %v253_v1 = vadd.f32 %v2355_v53, %v245_v61  ;;  %v280_v13 = vsel %vm213_vm2, %v276_v6, %v277_v2 }
 0x103   :  { %v278_v3 = vrot.slane %v256_v63, 1  ;;  %v284_v17 = vmax.f32 %v254_v62, %v280_v13  ;;  %2485 = vmatpush3.bf16.msra.mxu0 %v2649_v23 }
 0x104   :  { %v275_v5 = vrot.slane %v253_v1, 1  ;;  %2486 = vmatprep.subr.bf16.mxu0 %v2800_v4 }
 0x105   :  { %v279_v7 = vsel %vm213_vm2, %v277_v2, %v278_v3 }
 0x106   :  { %v282_v8 = vsel %vm213_vm2, %v278_v3, %v275_v5  ;;  %v285_v9 = vmax.f32 %v255_v59, %v279_v7  ;;  %v281_v10 = vsel %vm213_vm2, %v275_v5, %v276_v6 }
 0x107   :  { %v286_v12 = vmax.f32 %v256_v63, %v282_v8  ;;  %v283_v16 = vmax.f32 %v253_v1, %v281_v10  ;;  %2487 = vmatpush3.bf16.msra.mxu0 %v2650_v24 }
 0x108   :  { %2488 = vmatprep.subr.bf16.mxu0 %v2800_v4 }
 0x109   :  { %v2600_v15 = vpack.i.bf16 %v286_v12, %v285_v9  ;;  %v2605_v19 = vpack.i.bf16 %v284_v17, %v283_v16 }
 0x10b   :  { %2601 = vrot.lane.b32.xlu0 %v2600_v15, %s2802_s0  ;;  %2489 = vmatpush3.bf16.msra.mxu0 %v2651_v38 }
 0x10c   :  { %2490 = vmatprep.subr.bf16.mxu0 %v2800_v4 }
 0x10f   :  { %2606 = vrot.lane.b32.xlu0 %v2605_v19, %s2802_s0  ;;  %2491 = vmatpush3.bf16.msra.mxu0 %v2652_v39 }
 0x110   :  { %2496 = vmatprep.subr.bf16.mxu0 %v2800_v4 }
 0x17d   :  { %v2602_v25 = vpop.permute.xlu0 %2601 }
 0x17e   :  { %v2604_v26 = vunpack.i.h.bf16 %v2602_v25  ;;  %v2603_v27 = vunpack.i.l.bf16 %v2602_v25 }
 0x180   :  { %v298_v28 = vmax.f32 %v286_v12, %v2604_v26  ;;  %v297_v29 = vmax.f32 %v285_v9, %v2603_v27 }
 0x181   :  { %v2607_v30 = vpop.permute.xlu0 %2606 }
 0x182   :  { %v2609_v31 = vunpack.i.h.bf16 %v2607_v30  ;;  %v2608_v32 = vunpack.i.l.bf16 %v2607_v30  ;;  %v300_v33 = vpack.c.bf16 %v298_v28, %v297_v29 }
 0x184   :  { %v296_v34 = vmax.f32 %v284_v17, %v2609_v31  ;;  %v295_v35 = vmax.f32 %v283_v16, %v2608_v32  ;;  %2469 = vmatpush3.bf16.msra.mxu1 %v300_v33 }
 0x185   :  { %2470 = vmatprep.subr.bf16.mxu1 %v2800_v4 }
 0x186   :  { %v299_v36 = vpack.c.bf16 %v296_v34, %v295_v35 }
 0x188   :  { %2471 = vmatpush3.bf16.msra.mxu1 %v299_v36 }
 0x18b   :  { %2473 = vmatmul.mubr.msk.bf16.vlgmr.msra.gmra.mxu1 %vm306_vm8, %v2644_v37 }
 0x18c   :  { %783 = vmatprep.mubr.bf16.mxu1 %v2799_v0 }
 0x24b   :  { %v344_v40 = vpop.f32.mrf.mxu1 }
 0x24d   :  { %v2474_v41 = vpop.f32.mrf.mxu1 }
 0x24f   :  { %v347_v42 = vpop.f32.mrf.mxu1 }
 0x250   :  { %v351_v43 = vpack.c.bf16 %v347_v42, %v344_v40 }
 0x251   :  { %v2475_v44 = vpop.f32.mrf.mxu1 }
 0x252   :  { %2493 = vmatmul.mubr.bf16.vlgmr.msra.gmra.mxu0 %v351_v43 }
 0x253   :  { %2498 = vmatprep.mubr.msk.bf16.mxu0 %vm2801_vm7, %v2800_v4 }
 0x312   :  { %v2911_v45 = vpop.f32.mrf.mxu0 }
 0x313   :  { %v441_v46 = vmul.f32 %v2911_v45, %v2911_v45 }
 0x314   :  { %v2494_v47 = vpop.f32.mrf.mxu0 }
 0x315   :  { %445 = vrot.lane.b32.xlu1 %v441_v46, %s2803_s2 }
 0x316   :  { %v2916_v48 = vpop.f32.mrf.mxu0 }
 0x317   :  { %v442_v49 = vmul.f32 %v2916_v48, %v2916_v48 }
 0x318   :  { %v2495_v50 = vpop.f32.mrf.mxu0 }
 0x319   :  { %447 = vrot.lane.b32.xlu1 %v442_v49, %s2803_s2 }
 0x387   :  { %v446_v51 = vpop.permute.xlu1 %445 }
 0x388   :  { %v452_v53 = vsel %vm451_vm9, %v2911_v45, %v446_v51  ;;  %v63_v51 = vld [vmem:[#allocation7 + $0x2] sm:$0x1] }
 0x38b   :  { %v448_v52 = vpop.permute.xlu1 %447 }
 0x38c   :  { %v453_v54 = vsel %vm451_vm9, %v2916_v48, %v448_v52  ;;  %v2961_v52 = vsub.s32 0, %v2849_v11 }
 0x38d   :  { %v454_v55 = vadd.f32 %v453_v54, %v452_v53 }
 0x38f   :  { %v455_v56 = vrot.slane %v454_v55, 4 }
 0x391   :  { %v456_v57 = vadd.f32 %v455_v56, %v454_v55  ;;  %v64_v55 = vld [vmem:[#allocation7 + $0x3] sm:$0x1] }
 0x393   :  { %v457_v58 = vrot.slane %v456_v57, 2 }
 0x395   :  { %v458_v59 = vadd.f32 %v457_v58, %v456_v57 }
 0x397   :  { %v459_v60 = vrot.slane %v458_v59, 1 }
 0x399   :  { %v460_v61 = vadd.f32 %v459_v60, %v458_v59 }
 0x39b   :  { %474 = vrot.lane.b32.xlu0 %v460_v61, %s2803_s2 }
 0x39f   :  { %462 = vrot.lane.b32.xlu0 %v460_v61, %s2803_s2 }
 0x40d   :  { %v475_v62 = vpop.permute.xlu0 %474 }
 0x40e   :  { %477 = vrot.lane.b32.xlu1 %v475_v62, %s2803_s2 }
 0x411   :  { %v463_v63 = vpop.permute.xlu0 %462 }
 0x412   :  { %v464_v1 = vsel %vm461_vm10, %v463_v63, %v460_v61 }
 0x413   :  { %465 = vrot.lane.b32.xlu0 %v464_v1, %s2803_s2 }
 0x480   :  { %v478_v2 = vpop.permute.xlu1 %477 }
 0x481   :  { %v479_v3 = vsel %vm461_vm10, %v478_v2, %v475_v62 }
 0x482   :  { %480 = vrot.lane.b32.xlu1 %v479_v3, %s2803_s2 }
 0x485   :  { %v466_v5 = vpop.permute.xlu0 %465 }
 0x486   :  { %v467_v6 = vsel %vm461_vm10, %v466_v5, %v460_v61 }
 0x487   :  { %469 = vrot.lane.b32.xlu0 %v467_v6, %s2802_s0 }
 0x4f4   :  { %v481_v7 = vpop.permute.xlu1 %480 }
 0x4f5   :  { %v482_v8 = vsel %vm461_vm10, %v481_v7, %v475_v62 }
 0x4f6   :  { %484 = vrot.lane.b32.xlu1 %v482_v8, %s2804_s30 }
 0x4f9   :  { %v470_v9 = vpop.permute.xlu0 %469 }
 0x4fa   :  { %v472_v10 = vadd.f32 %v470_v9, %v460_v61 }
 0x4fc   :  { %488 = vrot.lane.b32.xlu0 %v472_v10, %s2803_s2 }
 0x568   :  { %v485_v12 = vpop.permute.xlu1 %484 }
 0x569   :  { %v487_v13 = vadd.f32 %v485_v12, %v460_v61 }
 0x56b   :  { %500 = vrot.lane.b32.xlu1 %v487_v13, %s2803_s2 }
 0x56e   :  { %v489_v15 = vpop.permute.xlu0 %488 }
 0x56f   :  { %v490_v16 = vsel %vm461_vm10, %v489_v15, %v472_v10 }
 0x570   :  { %491 = vrot.lane.b32.xlu0 %v490_v16, %s2803_s2 }
 0x5dd   :  { %v501_v17 = vpop.permute.xlu1 %500 }
 0x5de   :  { %503 = vrot.lane.b32.xlu1 %v501_v17, %s2803_s2 }
 0x5e2   :  { %v492_v18 = vpop.permute.xlu0 %491 }
 0x5e3   :  { %v493_v19 = vsel %vm461_vm10, %v492_v18, %v472_v10 }
 0x5e4   :  { %495 = vrot.lane.b32.xlu0 %v493_v19, %s2805_s4 }
 0x650   :  { %v504_v20 = vpop.permute.xlu1 %503 }
 0x651   :  { %v505_v21 = vsel %vm461_vm10, %v504_v20, %v501_v17 }
 0x652   :  { %506 = vrot.lane.b32.xlu1 %v505_v21, %s2803_s2 }
 0x656   :  { %v496_v22 = vpop.permute.xlu0 %495 }
 0x657   :  { %v498_v23 = vadd.f32 %v496_v22, %v472_v10 }
 0x659   :  { %514 = vrot.lane.b32.xlu0 %v498_v23, %s2803_s2 }
 0x6c4   :  { %v507_v24 = vpop.permute.xlu1 %506 }
 0x6c5   :  { %v508_v25 = vsel %vm461_vm10, %v507_v24, %v501_v17 }
 0x6c6   :  { %510 = vrot.lane.b32.xlu1 %v508_v25, %s2806_s5 }
 0x6cb   :  { %v515_v26 = vpop.permute.xlu0 %514 }
 0x6cc   :  { %v516_v27 = vsel %vm461_vm10, %v515_v26, %v498_v23 }
 0x6cd   :  { %517 = vrot.lane.b32.xlu0 %v516_v27, %s2803_s2 }
 0x738   :  { %v511_v28 = vpop.permute.xlu1 %510 }
 0x739   :  { %v513_v29 = vadd.f32 %v511_v28, %v487_v13 }
 0x73b   :  { %526 = vrot.lane.b32.xlu1 %v513_v29, %s2803_s2 }
 0x73f   :  { %v518_v30 = vpop.permute.xlu0 %517 }
 0x740   :  { %v519_v31 = vsel %vm461_vm10, %v518_v30, %v498_v23 }
 0x741   :  { %521 = vrot.lane.b32.xlu0 %v519_v31, %s2807_s6 }
 0x7ad   :  { %v527_v32 = vpop.permute.xlu1 %526 }
 0x7ae   :  { %529 = vrot.lane.b32.xlu1 %v527_v32, %s2803_s2 }
 0x7b3   :  { %v522_v33 = vpop.permute.xlu0 %521 }
 0x7b4   :  { %v524_v34 = vadd.f32 %v522_v33, %v498_v23 }
 0x7b6   :  { %v540_v35 = vmul.f32 0.0078125, %v524_v34 }
 0x7b8   :  { %v542_v38 = vmul.f32 %v540_v35, %v540_v35 }
 0x820   :  { %v530_v36 = vpop.permute.xlu1 %529 }
 0x821   :  { %v531_v37 = vsel %vm461_vm10, %v530_v36, %v527_v32 }
 0x822   :  { %532 = vrot.lane.b32.xlu1 %v531_v37, %s2803_s2 }
 0x826   :  { %544 = vrot.lane.b32.xlu1 %v542_v38, %s2803_s2 }
 0x894   :  { %v533_v39 = vpop.permute.xlu1 %532 }
 0x895   :  { %v534_v40 = vsel %vm461_vm10, %v533_v39, %v527_v32 }
 0x896   :  { %536 = vrot.lane.b32.xlu0 %v534_v40, %s2808_s7 }
 0x898   :  { %v545_v44 = vpop.permute.xlu1 %544 }
 0x908   :  { %v537_v41 = vpop.permute.xlu0 %536 }
 0x909   :  { %v539_v42 = vadd.f32 %v537_v41, %v513_v29 }
 0x90b   :  { %v541_v43 = vmul.f32 0.0078125, %v539_v42 }
 0x90d   :  { %v547_v46 = vsub.f32 %v541_v43, %v545_v44 }
 0x90f   :  { %v548_v47 = vmax.f32 %v547_v46, 0.0 }
 0x911   :  { %v549_v49 = vadd.f32 1e-05, %v548_v47 }
 0x913   :  { %2690 = vrsqrt.f32 %v549_v49 }
 0x920   :  { %v2691_v50 = vpop.eup %2690 }
 0x921   :  { %552 = vrot.lane.b32.xlu0 %v2691_v50, %s2803_s2 }
 0x993   :  { %v553_v53 = vpop.permute.xlu0 %552 }
 0x994   :  { %v555_v54 = vmul.f32 %v553_v53, %v63_v51 }
 0x996   :  { %v556_v56 = vmul.f32 %v555_v54, %v540_v35  ;;  %v561_v57 = vrot.slane %v555_v54, %v2961_v52 }
 0x998   :  { %v557_v58 = vsub.f32 %v64_v55, %v556_v56  ;;  %v562_v59 = vmul.f32 %v561_v57, %v2911_v45  ;;  %v563_v60 = vmul.f32 %v561_v57, %v2916_v48 }
 0x99a   :  { %v567_v61 = vrot.slane %v557_v58, %v2961_v52 }
 0x99c   :  { %v568_v62 = vadd.f32 %v567_v61, %v562_v59  ;;  %v569_v63 = vadd.f32 %v567_v61, %v563_v60  ;;  %v2653_v59 = vld [vmem:[#allocation5 + $0x138] ss:$12 sps:$4 sm:$0xff]   ;;  %v2655_v60 = vld [vmem:[#allocation5 + $0x13c] ss:$12 sps:$4 sm:$0xff]  }
 0x99d   :  { %759 = vmatprep.subr.bf16.mxu1 %v2655_v60 }
 0x99e   :  { %v2967_v1 = vmax.f32 %v568_v62, 0.0  ;;  %v2969_v2 = vmax.f32 %v569_v63, 0.0  ;;  %760 = vmatpush1.bf16.msra.mxu1 %v2653_v59 }
 0x9a0   :  { %v573_v3 = vmul.f32 %v2969_v2, %v2969_v2  ;;  %v572_v5 = vmul.f32 %v2967_v1, %v2967_v1 }
 0x9a2   :  { %578 = vrot.lane.b32.xlu0 %v573_v3, %s2803_s2  ;;  %576 = vrot.lane.b32.xlu1 %v572_v5, %s2803_s2 }
 0xa14   :  { %v579_v45 = vpop.permute.xlu0 %578  ;;  %v577_v48 = vpop.permute.xlu1 %576 }
 0xa15   :  { %v583_v6 = vsel %vm451_vm9, %v2969_v2, %v579_v45  ;;  %v582_v7 = vsel %vm451_vm9, %v2967_v1, %v577_v48 }
 0xa16   :  { %v584_v8 = vadd.f32 %v583_v6, %v582_v7  ;;  %v2658_v6 = vld [vmem:[#allocation5 + $0x124] ss:$12 sps:$4 sm:$0xff]   ;;  %v2656_v7 = vld [vmem:[#allocation5 + $0x120] ss:$12 sps:$4 sm:$0xff]  }
 0xa17   :  { %761 = vmatprep.subr.bf16.mxu1 %v2658_v6 }
 0xa18   :  { %v585_v9 = vrot.slane %v584_v8, 4  ;;  %762 = vmatpush1.bf16.msra.mxu1 %v2656_v7 }
 0xa1a   :  { %v586_v10 = vadd.f32 %v585_v9, %v584_v8  ;;  %v2661_v8 = vld [vmem:[#allocation5 + $0x10c] ss:$12 sps:$4 sm:$0xff]   ;;  %v2659_v9 = vld [vmem:[#allocation5 + $0x108] ss:$12 sps:$4 sm:$0xff]  }
 0xa1b   :  { %763 = vmatprep.subr.bf16.mxu1 %v2661_v8 }
 0xa1c   :  { %v587_v12 = vrot.slane %v586_v10, 2  ;;  %764 = vmatpush1.bf16.msra.mxu1 %v2659_v9 }
 0xa1e   :  { %v588_v13 = vadd.f32 %v587_v12, %v586_v10  ;;  %v2664_v10 = vld [vmem:[#allocation5 + $0xf4] ss:$12 sps:$4 sm:$0xff]   ;;  %v2662_v12 = vld [vmem:[#allocation5 + $0xf0] ss:$12 sps:$4 sm:$0xff]  }
 0xa1f   :  { %765 = vmatprep.subr.bf16.mxu1 %v2664_v10 }
 0xa20   :  { %v589_v15 = vrot.slane %v588_v13, 1  ;;  %766 = vmatpush1.bf16.msra.mxu1 %v2662_v12 }
 0xa22   :  { %v590_v16 = vadd.f32 %v589_v15, %v588_v13  ;;  %v65_v15 = vld [vmem:[#allocation7 + $0x4] sm:$0x1] }
 0xa24   :  { %603 = vrot.lane.b32.xlu1 %v590_v16, %s2803_s2 }
 0xa28   :  { %591 = vrot.lane.b32.xlu1 %v590_v16, %s2803_s2 }
 0xa96   :  { %v604_v17 = vpop.permute.xlu1 %603 }
 0xa97   :  { %606 = vrot.lane.b32.xlu0 %v604_v17, %s2803_s2 }
 0xa9a   :  { %v592_v18 = vpop.permute.xlu1 %591 }
 0xa9b   :  { %v593_v19 = vsel %vm461_vm10, %v592_v18, %v590_v16  ;;  %v66_v18 = vld [vmem:[#allocation7 + $0x5] sm:$0x1] }
 0xa9c   :  { %594 = vrot.lane.b32.xlu1 %v593_v19, %s2803_s2 }
 0xb09   :  { %v607_v20 = vpop.permute.xlu0 %606 }
 0xb0a   :  { %v608_v21 = vsel %vm461_vm10, %v607_v20, %v604_v17 }
 0xb0b   :  { %609 = vrot.lane.b32.xlu0 %v608_v21, %s2803_s2 }
 0xb0e   :  { %v595_v22 = vpop.permute.xlu1 %594 }
 0xb0f   :  { %v596_v23 = vsel %vm461_vm10, %v595_v22, %v590_v16 }
 0xb10   :  { %598 = vrot.lane.b32.xlu1 %v596_v23, %s2802_s0 }
 0xb7d   :  { %v610_v24 = vpop.permute.xlu0 %609 }
 0xb7e   :  { %v611_v25 = vsel %vm461_vm10, %v610_v24, %v604_v17 }
 0xb7f   :  { %613 = vrot.lane.b32.xlu0 %v611_v25, %s2804_s30 }
 0xb82   :  { %v599_v26 = vpop.permute.xlu1 %598 }
 0xb83   :  { %v601_v27 = vadd.f32 %v599_v26, %v590_v16 }
 0xb85   :  { %617 = vrot.lane.b32.xlu1 %v601_v27, %s2803_s2 }
 0xbf1   :  { %v614_v28 = vpop.permute.xlu0 %613 }
 0xbf2   :  { %v616_v29 = vadd.f32 %v614_v28, %v590_v16 }
 0xbf4   :  { %629 = vrot.lane.b32.xlu0 %v616_v29, %s2803_s2 }
 0xbf7   :  { %v618_v30 = vpop.permute.xlu1 %617 }
 0xbf8   :  { %v619_v31 = vsel %vm461_vm10, %v618_v30, %v601_v27  ;;  %v803_v30 = vand.u32 7, %v2852_v14 }
 0xbf9   :  { %620 = vrot.lane.b32.xlu1 %v619_v31, %s2803_s2 }
 0xbfa   :  { %vm3028_vm12 = vcmp.eq.s32.totalorder %v803_v30, 0  ;;  %vm3044_vm13 = vcmp.eq.s32.totalorder %v803_v30, 7 }
 0xc66   :  { %v630_v32 = vpop.permute.xlu0 %629 }
 0xc67   :  { %632 = vrot.lane.b32.xlu0 %v630_v32, %s2803_s2 }
 0xc6b   :  { %v621_v33 = vpop.permute.xlu1 %620 }
 0xc6c   :  { %v622_v34 = vsel %vm461_vm10, %v621_v33, %v601_v27 }
 0xc6d   :  { %624 = vrot.lane.b32.xlu1 %v622_v34, %s2805_s4 }
 0xcd9   :  { %v633_v35 = vpop.permute.xlu0 %632 }
 0xcda   :  { %v634_v36 = vsel %vm461_vm10, %v633_v35, %v630_v32 }
 0xcdb   :  { %635 = vrot.lane.b32.xlu0 %v634_v36, %s2803_s2 }
 0xcdf   :  { %v625_v37 = vpop.permute.xlu1 %624 }
 0xce0   :  { %v627_v38 = vadd.f32 %v625_v37, %v601_v27 }
 0xce2   :  { %643 = vrot.lane.b32.xlu1 %v627_v38, %s2803_s2 }
 0xd4d   :  { %v636_v39 = vpop.permute.xlu0 %635 }
 0xd4e   :  { %v637_v40 = vsel %vm461_vm10, %v636_v39, %v630_v32 }
 0xd4f   :  { %639 = vrot.lane.b32.xlu0 %v637_v40, %s2806_s5  ;;  %v2665_v40 = vld [vmem:[#allocation5 + $0x198] ss:$12 sps:$4 sm:$0xff]  }
 0xd54   :  { %v644_v41 = vpop.permute.xlu1 %643 }
 0xd55   :  { %v645_v42 = vsel %vm461_vm10, %v644_v41, %v627_v38  ;;  %v2667_v41 = vld [vmem:[#allocation5 + $0x19c] ss:$12 sps:$4 sm:$0xff]  }
 0xd56   :  { %646 = vrot.lane.b32.xlu1 %v645_v42, %s2803_s2  ;;  %911 = vmatprep.subr.bf16.mxu1 %v2667_v41 }
 0xdc1   :  { %v640_v43 = vpop.permute.xlu0 %639 }
 0xdc2   :  { %v642_v44 = vadd.f32 %v640_v43, %v616_v29  ;;  %v802_v29 = vand.u32 7, %v2849_v11 }
 0xdc4   :  { %655 = vrot.lane.b32.xlu0 %v642_v44, %s2803_s2  ;;  %vm3024_vm11 = vcmp.eq.s32.totalorder %v802_v29, 0  ;;  %vm3050_vm14 = vcmp.eq.s32.totalorder %v802_v29, 7 }
 0xdc8   :  { %v647_v46 = vpop.permute.xlu1 %646 }
 0xdc9   :  { %v648_v47 = vsel %vm461_vm10, %v647_v46, %v627_v38 }
 0xdca   :  { %650 = vrot.lane.b32.xlu1 %v648_v47, %s2807_s6  ;;  %v2670_v47 = vld [vmem:[#allocation5 + $0x184] ss:$12 sps:$4 sm:$0xff]  }
 0xe36   :  { %v656_v49 = vpop.permute.xlu0 %655 }
 0xe37   :  { %658 = vrot.lane.b32.xlu0 %v656_v49, %s2803_s2 }
 0xe3c   :  { %v651_v50 = vpop.permute.xlu1 %650 }
 0xe3d   :  { %v653_v51 = vadd.f32 %v651_v50, %v627_v38 }
 0xe3f   :  { %v669_v53 = vmul.f32 0.0078125, %v653_v51 }
 0xe41   :  { %v671_v56 = vmul.f32 %v669_v53, %v669_v53 }
 0xea9   :  { %v659_v54 = vpop.permute.xlu0 %658 }
 0xeaa   :  { %v660_v55 = vsel %vm461_vm10, %v659_v54, %v656_v49  ;;  %v2375_v54 = vld [vmem:[#allocation7 + $0x1] ss:$0 sm:$0xff] }
 0xeab   :  { %661 = vrot.lane.b32.xlu0 %v660_v55, %s2803_s2  ;;  %v2671_v55 = vld [vmem:[#allocation5 + $0x168] ss:$12 sps:$4 sm:$0xff]  }
 0xeaf   :  { %673 = vrot.lane.b32.xlu0 %v671_v56, %s2803_s2  ;;  %v2676_v56 = vld [vmem:[#allocation5 + $0x154] ss:$12 sps:$4 sm:$0xff]  }
 0xf1d   :  { %v662_v57 = vpop.permute.xlu0 %661 }
 0xf1e   :  { %v663_v58 = vsel %vm461_vm10, %v662_v57, %v656_v49  ;;  %v2668_v49 = vld [vmem:[#allocation5 + $0x180] ss:$12 sps:$4 sm:$0xff]   ;;  %v2674_v57 = vld [vmem:[#allocation5 + $0x150] ss:$12 sps:$4 sm:$0xff]  }
 0xf1f   :  { %665 = vrot.lane.b32.xlu1 %v663_v58, %s2808_s7 }
 0xf21   :  { %v674_v3 = vpop.permute.xlu0 %673 }
 0xf91   :  { %v666_v61 = vpop.permute.xlu1 %665 }
 0xf92   :  { %v668_v62 = vadd.f32 %v666_v61, %v642_v44 }
 0xf94   :  { %v670_v63 = vmul.f32 0.0078125, %v668_v62 }
 0xf96   :  { %v676_v5 = vsub.f32 %v670_v63, %v674_v3 }
 0xf98   :  { %v677_v45 = vmax.f32 %v676_v5, 0.0 }
 0xf9a   :  { %v678_v48 = vadd.f32 1e-05, %v677_v45 }
 0xf9c   :  { %2692 = vrsqrt.f32 %v678_v48 }
 0xfa9   :  { %v2693_v13 = vpop.eup %2692 }
 0xfaa   :  { %681 = vrot.lane.b32.xlu1 %v2693_v13, %s2803_s2 }
0x101c   :  { %v682_v16 = vpop.permute.xlu1 %681 }
0x101d   :  { %v684_v17 = vmul.f32 %v682_v16, %v65_v15 }
0x101f   :  { %v685_v19 = vmul.f32 %v684_v17, %v669_v53  ;;  %v690_v20 = vrot.slane %v684_v17, %v2961_v52  ;;  %v2673_v53 = vld [vmem:[#allocation5 + $0x16c] ss:$12 sps:$4 sm:$0xff]  }
0x1021   :  { %v686_v21 = vsub.f32 %v66_v18, %v685_v19  ;;  %v691_v22 = vmul.f32 %v690_v20, %v2967_v1  ;;  %v692_v23 = vmul.f32 %v690_v20, %v2969_v2 }
0x1023   :  { %v696_v24 = vrot.slane %v686_v21, %v2961_v52 }
0x1025   :  { %v697_v25 = vadd.f32 %v696_v24, %v691_v22  ;;  %v698_v26 = vadd.f32 %v696_v24, %v692_v23 }
0x1027   :  { %v707_v27 = vpack.c.bf16 %v698_v26, %v697_v25 }
0x1029   :  { %2374 = vmatmul.mubr.msk.bf16.vlgmr.msra.gmra.mxu1 %vm451_vm9, %v707_v27  ;;  %v2385_v27 = vld [vmem:[#allocation7 + $0x8] ss:$0 sm:$0xff] }
0x102a   :  { %935 = vmatprep.mubr.bf16.mxu1 %v2799_v0  ;;  %912 = vmatpush1.bf16.msra.mxu1 %v2665_v40 }
0x102b   :  { %913 = vmatprep.subr.bf16.mxu1 %v2670_v47 }
0x102e   :  { %914 = vmatpush1.bf16.msra.mxu1 %v2668_v49 }
0x102f   :  { %915 = vmatprep.subr.bf16.mxu1 %v2673_v53 }
0x1032   :  { %916 = vmatpush1.bf16.msra.mxu1 %v2671_v55 }
0x1033   :  { %917 = vmatprep.subr.bf16.mxu1 %v2676_v56 }
0x1036   :  { %918 = vmatpush1.bf16.msra.mxu1 %v2674_v57 }
0x1037   :  { %2514 = vmatprep.subr.bf16.mxu1 %v2800_v4 }
0x10e9   :  { %v785_v28 = vpop.f32.mrf.mxu1 }
0x10ea   :  { %v794_v33 = vrot.slane %v785_v28, 7 }
0x10eb   :  { %v787_v31 = vpop.f32.mrf.mxu1 }
0x10ec   :  { %v798_v36 = vrot.slane %v787_v31, 1 }
0x10ed   :  { %v789_v32 = vpop.f32.mrf.mxu1 }
0x10ee   :  { %v795_v1 = vrot.slane %v789_v32, 7 }
0x10ef   :  { %v791_v35 = vpop.f32.mrf.mxu1 }
0x10f0   :  { %v799_v0 = vrot.slane %v791_v35, 1  ;;  %v797_v37 = vsel %vm204_vm1, %v795_v1, %v794_v33  ;;  %v796_v14 = vsel %vm204_vm1, %v794_v33, %v795_v1 }
0x10f1   :  { %v806_v38 = vsel %vm3024_vm11, 0.0, %v797_v37  ;;  %v807_v39 = vsel %vm3028_vm12, 0.0, %v796_v14 }
0x10f2   :  { %814 = vrot.lane.b32.xlu0 %v806_v38, %s2803_s2  ;;  %816 = vrot.lane.b32.xlu1 %v807_v39, %s2803_s2  ;;  %v801_v42 = vsel %vm213_vm2, %v799_v0, %v798_v36  ;;  %v800_v44 = vsel %vm213_vm2, %v798_v36, %v799_v0 }
0x10f3   :  { %v811_v50 = vsel %vm3044_vm13, 0.0, %v801_v42  ;;  %v810_v51 = vsel %vm3050_vm14, 0.0, %v800_v44 }
0x10f6   :  { %826 = vrot.lane.b32.xlu1 %v811_v50, %s2803_s2  ;;  %824 = vrot.lane.b32.xlu0 %v810_v51, %s2803_s2 }
0x10fa   :  { %837 = vrot.lane.b32.xlu0 %v2375_v54, %s2803_s2 }
0x1164   :  { %v815_v58 = vpop.permute.xlu0 %814  ;;  %v817_v59 = vpop.permute.xlu1 %816 }
0x1165   :  { %v820_v62 = vadd.f32 %v815_v58, %v785_v28  ;;  %v821_v63 = vadd.f32 %v817_v59, %v789_v32 }
0x1168   :  { %v827_v60 = vpop.permute.xlu1 %826  ;;  %v825_v61 = vpop.permute.xlu0 %824 }
0x1169   :  { %v831_v3 = vadd.f32 %v827_v60, %v821_v63  ;;  %v830_v5 = vadd.f32 %v825_v61, %v820_v62 }
0x116c   :  { %v838_v45 = vpop.permute.xlu0 %837 }
0x116d   :  { %v840_v48 = vadd.f32 %v838_v45, %v830_v5  ;;  %v841_v6 = vadd.f32 %v838_v45, %v831_v3 }
0x116f   :  { %v856_v7 = vpack.c.bf16 %v841_v6, %v840_v48 }
0x1171   :  { %858 = vrot.lane.b32.xlu1 %v856_v7, %s2803_s2 }
0x11e3   :  { %v859_v8 = vpop.permute.xlu1 %858 }
0x11e4   :  { %2384 = vmatmul.mubr.msk.bf16.vlgmr.msra.gmra.mxu1 %vm451_vm9, %v859_v8 }
0x11e5   :  { %2518 = vmatprep.mubr.msk.bf16.mxu1 %vm2801_vm7, %v2800_v4 }
0x12a4   :  { %v937_v9 = vpop.f32.mrf.mxu1 }
0x12a5   :  { %v946_v13 = vrot.slane %v937_v9, 7 }
0x12a6   :  { %v939_v10 = vpop.f32.mrf.mxu1 }
0x12a7   :  { %v950_v17 = vrot.slane %v939_v10, 1 }
0x12a8   :  { %v941_v12 = vpop.f32.mrf.mxu1 }
0x12a9   :  { %v947_v15 = vrot.slane %v941_v12, 7 }
0x12aa   :  { %v943_v16 = vpop.f32.mrf.mxu1 }
0x12ab   :  { %v951_v18 = vrot.slane %v943_v16, 1  ;;  %v949_v19 = vsel %vm204_vm1, %v947_v15, %v946_v13  ;;  %v948_v20 = vsel %vm204_vm1, %v946_v13, %v947_v15  ;;  %v988_v15 = vld [vmem:[#allocation5 + $0x1b0] sm:$0xf] }
0x12ac   :  { %v954_v21 = vsel %vm3024_vm11, 0.0, %v949_v19  ;;  %v955_v22 = vsel %vm3028_vm12, 0.0, %v948_v20  ;;  %v2677_v16 = vld [vmem:[#allocation5 + $0x204] ss:$12 sps:$4 sm:$0xff]   ;;  %v2680_v19 = vld [vmem:[#allocation5 + $0x1bc] ss:$12 sps:$4 sm:$0xff]  }
0x12ad   :  { %960 = vrot.lane.b32.xlu0 %v954_v21, %s2803_s2  ;;  %962 = vrot.lane.b32.xlu1 %v955_v22, %s2803_s2  ;;  %v953_v23 = vsel %vm213_vm2, %v951_v18, %v950_v17  ;;  %v952_v24 = vsel %vm213_vm2, %v950_v17, %v951_v18  ;;  %v2678_v17 = vld [vmem:[#allocation5 + $0x1ec] ss:$12 sps:$4 sm:$0xff]   ;;  %v2679_v18 = vld [vmem:[#allocation5 + $0x1d4] ss:$12 sps:$4 sm:$0xff]   ;;  %vm2049_vm11 = vcmask 1041408   ;;  %vm2045_vm12 = vcmask 31744  }
0x12ae   :  { %v957_v25 = vsel %vm3044_vm13, 0.0, %v953_v23  ;;  %v956_v26 = vsel %vm3050_vm14, 0.0, %v952_v24  ;;  %vm2149_vm13 = vcmask 123904  }
0x12b1   :  { %972 = vrot.lane.b32.xlu1 %v957_v25, %s2803_s2  ;;  %970 = vrot.lane.b32.xlu0 %v956_v26, %s2803_s2 }
0x12b5   :  { %983 = vrot.lane.b32.xlu0 %v2385_v27, %s2803_s2 }
0x131f   :  { %v961_v28 = vpop.permute.xlu0 %960  ;;  %v963_v29 = vpop.permute.xlu1 %962 }
0x1320   :  { %v966_v32 = vadd.f32 %v961_v28, %v937_v9  ;;  %v967_v33 = vadd.f32 %v963_v29, %v941_v12 }
0x1323   :  { %v973_v30 = vpop.permute.xlu1 %972  ;;  %v971_v31 = vpop.permute.xlu0 %970 }
0x1324   :  { %v977_v1 = vadd.f32 %v973_v30, %v967_v33  ;;  %v976_v2 = vadd.f32 %v971_v31, %v966_v32 }
0x1327   :  { %v984_v34 = vpop.permute.xlu0 %983 }
0x1328   :  { %v986_v35 = vadd.f32 %v984_v34, %v976_v2  ;;  %v987_v36 = vadd.f32 %v984_v34, %v977_v1 }
0x132a   :  { %v2610_v0 = vpack.i.bf16 %v987_v36, %v986_v35 }
0x132c   :  { %2611 = vrot.lane.b32.xlu1 %v2610_v0, %s2803_s2 }
0x139e   :  { %v2612_v37 = vpop.permute.xlu1 %2611 }
0x139f   :  { %v2614_v14 = vunpack.i.h.bf16 %v2612_v37  ;;  %v2613_v38 = vunpack.i.l.bf16 %v2612_v37 }
0x13a1   :  { %v1006_v39 = vrot.slane %v2614_v14, 1  ;;  %v1005_v40 = vrot.slane %v2613_v38, 1 }
0x13a3   :  { %v1007_v41 = vsel %vm213_vm2, %v1005_v40, %v1006_v39  ;;  %v1008_v42 = vsel %vm213_vm2, %v1006_v39, %v1005_v40 }
0x13a4   :  { %v2615_v43 = vpack.i.bf16 %v1008_v42, %v1007_v41 }
0x13a6   :  { %2616 = vrot.lane.b32.xlu0 %v2615_v43, %s2803_s2 }
0x1418   :  { %v2617_v44 = vpop.permute.xlu0 %2616 }
0x1419   :  { %v2619_v46 = vunpack.i.h.bf16 %v2617_v44  ;;  %v2618_v47 = vunpack.i.l.bf16 %v2617_v44 }
0x141b   :  { %v1018_v49 = vmax.f32 %v987_v36, %v2619_v46  ;;  %v1017_v50 = vmax.f32 %v986_v35, %v2618_v47 }
0x141d   :  { %v2620_v51 = vpack.i.bf16 %v1018_v49, %v1017_v50 }
0x141f   :  { %2621 = vrot.lane.b32.xlu1 %v2620_v51, %s2803_s2 }
0x1491   :  { %v2622_v53 = vpop.permute.xlu1 %2621 }
0x1492   :  { %v2624_v54 = vunpack.i.h.bf16 %v2622_v53  ;;  %v2623_v55 = vunpack.i.l.bf16 %v2622_v53  ;;  %2626 = vrot.lane.b32.xlu0 %v2622_v53, %s2803_s2 }
0x1504   :  { %v2627_v56 = vpop.permute.xlu0 %2626 }
0x1505   :  { %v2629_v57 = vunpack.i.h.bf16 %v2627_v56  ;;  %v2628_v58 = vunpack.i.l.bf16 %v2627_v56 }
0x1507   :  { %v1029_v59 = vsel %vm461_vm10, %v2628_v58, %v2623_v55  ;;  %v1032_v60 = vsel %vm461_vm10, %v2629_v57, %v2624_v54 }
0x1508   :  { %v2630_v61 = vpack.i.bf16 %v1032_v60, %v1029_v59 }
0x150a   :  { %2631 = vrot.lane.b32.xlu1 %v2630_v61, %s2803_s2 }
0x157c   :  { %v2632_v62 = vpop.permute.xlu1 %2631 }
0x157d   :  { %v2634_v63 = vunpack.i.h.bf16 %v2632_v62  ;;  %v2633_v3 = vunpack.i.l.bf16 %v2632_v62 }
0x157f   :  { %v1037_v5 = vsel %vm461_vm10, %v2633_v3, %v2623_v55  ;;  %v1038_v45 = vsel %vm461_vm10, %v2634_v63, %v2624_v54 }
0x1580   :  { %v2635_v48 = vpack.i.bf16 %v1038_v45, %v1037_v5 }
0x1582   :  { %2636 = vrot.lane.b32.xlu0 %v2635_v48, %s2804_s30 }
0x15f4   :  { %v2637_v6 = vpop.permute.xlu0 %2636 }
0x15f5   :  { %v2639_v7 = vunpack.i.h.bf16 %v2637_v6  ;;  %v2638_v8 = vunpack.i.l.bf16 %v2637_v6 }
0x15f7   :  { %v1048_v9 = vmax.f32 %v1018_v49, %v2639_v7  ;;  %v1047_v10 = vmax.f32 %v1017_v50, %v2638_v8 }
0x15f9   :  { %v1049_v12 = vpack.c.bf16 %v1048_v9, %v1047_v10  ;;  %v844_v10 = vld [vmem:[#allocation7 + $0xa] sm:$0x1] }
0x15fb   :  { %1051 = vrot.lane.b32.xlu1 %v1049_v12, %s2803_s2 }
0x166d   :  { %v1052_v13 = vpop.permute.xlu1 %1051 }
0x166e   :  { %2497 = vmatpush3.bf16.msra.mxu0 %v1052_v13 }
0x166f   :  { %2502 = vmatprep.subr.bf16.mxu0 %v2800_v4 }
0x1671   :  { %2499 = vmatmul.mubr.msk.bf16.vlgmr.msra.gmra.mxu0 %vm89_vm0, %v988_v15  ;;  %v845_v15 = vld [vmem:[#allocation7 + $0xb] sm:$0x1] }
0x1672   :  { %2503 = vmatpush3.bf16.msra.mxu0 %v2677_v16  ;;  %2510 = vmatprep.mubr.msk.bf16.mxu0 %vm2801_vm7, %v2800_v4 }
0x1673   :  { %2504 = vmatprep.subr.bf16.mxu0 %v2800_v4 }
0x1676   :  { %2505 = vmatpush3.bf16.msra.mxu0 %v2678_v17 }
0x1677   :  { %2506 = vmatprep.subr.bf16.mxu0 %v2800_v4 }
0x167a   :  { %2507 = vmatpush3.bf16.msra.mxu0 %v2679_v18 }
0x167b   :  { %2508 = vmatprep.subr.bf16.mxu0 %v2800_v4 }
0x167e   :  { %2509 = vmatpush3.bf16.msra.mxu0 %v2680_v19 }
0x167f   :  { %2530 = vmatprep.subr.bf16.mxu0 %v2800_v4 }
0x1731   :  { %v1091_v20 = vpop.f32.mrf.mxu0 }
0x1732   :  { %v1097_v21 = vpack.c.bf16 %v1091_v20, %v1091_v20 }
0x1733   :  { %v2500_v22 = vpop.f32.mrf.mxu0 }
0x1734   :  { %2511 = vmatmul.mubr.msk.bf16.vlgmr.msra.gmra.mxu0 %vm451_vm9, %v1097_v21 }
0x1735   :  { %v1094_v23 = vpop.f32.mrf.mxu0  ;;  %2532 = vmatprep.mubr.msk.bf16.mxu0 %vm2801_vm7, %v2800_v4 }
0x1737   :  { %v2501_v24 = vpop.f32.mrf.mxu0 }
0x17f4   :  { %v3113_v25 = vpop.f32.mrf.mxu0 }
0x17f5   :  { %v1165_v26 = vmul.f32 %v3113_v25, %v3113_v25 }
0x17f6   :  { %v2512_v27 = vpop.f32.mrf.mxu0 }
0x17f7   :  { %1167 = vrot.lane.b32.xlu0 %v1165_v26, %s2808_s7 }
0x17f8   :  { %v1162_v28 = vpop.f32.mrf.mxu0 }
0x17fa   :  { %v2513_v29 = vpop.f32.mrf.mxu0 }
0x1869   :  { %v1168_v30 = vpop.permute.xlu0 %1167 }
0x186a   :  { %v1170_v31 = vsel %vm306_vm8, %v3113_v25, %v1168_v30 }
0x186b   :  { %v1171_v32 = vsel %vm451_vm9, %v1170_v31, 0.0 }
0x186c   :  { %v1172_v33 = vrot.slane %v1171_v32, 4 }
0x186e   :  { %v1173_v1 = vadd.f32 %v1172_v33, %v1171_v32 }
0x1870   :  { %v1174_v2 = vrot.slane %v1173_v1, 2 }
0x1872   :  { %v1175_v34 = vadd.f32 %v1174_v2, %v1173_v1 }
0x1874   :  { %v1176_v35 = vrot.slane %v1175_v34, 1 }
0x1876   :  { %v1177_v36 = vadd.f32 %v1176_v35, %v1175_v34 }
0x1878   :  { %1179 = vrot.lane.b32.xlu0 %v1177_v36, %s2808_s7  ;;  %1191 = vrot.lane.b32.xlu1 %v1177_v36, %s2807_s6 }
0x18ea   :  { %v1180_v0 = vpop.permute.xlu0 %1179  ;;  %v1192_v37 = vpop.permute.xlu1 %1191 }
0x18eb   :  { %1194 = vrot.lane.b32.xlu1 %v1192_v37, %s2808_s7  ;;  %v1181_v14 = vsel %vm1178_vm15, %v1180_v0, %v1177_v36 }
0x18ec   :  { %1182 = vrot.lane.b32.xlu0 %v1181_v14, %s2808_s7 }
0x195d   :  { %v1195_v38 = vpop.permute.xlu1 %1194 }
0x195e   :  { %v1183_v39 = vpop.permute.xlu0 %1182  ;;  %v1196_v40 = vsel %vm1178_vm15, %v1195_v38, %v1192_v37 }
0x195f   :  { %1197 = vrot.lane.b32.xlu1 %v1196_v40, %s2808_s7  ;;  %v1184_v41 = vsel %vm1178_vm15, %v1183_v39, %v1177_v36 }
0x1960   :  { %1186 = vrot.lane.b32.xlu0 %v1184_v41, %s2802_s0 }
0x19d1   :  { %v1198_v42 = vpop.permute.xlu1 %1197 }
0x19d2   :  { %v1187_v43 = vpop.permute.xlu0 %1186  ;;  %v1199_v44 = vsel %vm1178_vm15, %v1198_v42, %v1192_v37 }
0x19d3   :  { %v1189_v46 = vadd.f32 %v1187_v43, %v1177_v36  ;;  %1201 = vrot.lane.b32.xlu1 %v1199_v44, %s2809_s8 }
0x19d5   :  { %1205 = vrot.lane.b32.xlu0 %v1189_v46, %s2808_s7 }
0x1a45   :  { %v1202_v47 = vpop.permute.xlu1 %1201 }
0x1a46   :  { %v1204_v49 = vadd.f32 %v1202_v47, %v1177_v36 }
0x1a47   :  { %v1206_v50 = vpop.permute.xlu0 %1205 }
0x1a48   :  { %1217 = vrot.lane.b32.xlu1 %v1204_v49, %s2807_s6  ;;  %v1207_v51 = vsel %vm1178_vm15, %v1206_v50, %v1189_v46 }
0x1a49   :  { %1208 = vrot.lane.b32.xlu0 %v1207_v51, %s2808_s7 }
0x1aba   :  { %v1218_v53 = vpop.permute.xlu1 %1217 }
0x1abb   :  { %v1209_v54 = vpop.permute.xlu0 %1208  ;;  %1220 = vrot.lane.b32.xlu1 %v1218_v53, %s2808_s7 }
0x1abc   :  { %v1210_v55 = vsel %vm1178_vm15, %v1209_v54, %v1189_v46 }
0x1abd   :  { %1212 = vrot.lane.b32.xlu0 %v1210_v55, %s2805_s4 }
0x1b2d   :  { %v1221_v56 = vpop.permute.xlu1 %1220 }
0x1b2e   :  { %v1222_v57 = vsel %vm1178_vm15, %v1221_v56, %v1218_v53 }
0x1b2f   :  { %v1213_v58 = vpop.permute.xlu0 %1212  ;;  %1223 = vrot.lane.b32.xlu1 %v1222_v57, %s2808_s7 }
0x1b30   :  { %v1215_v59 = vadd.f32 %v1213_v58, %v1189_v46 }
0x1b32   :  { %v1231_v60 = vmul.f32 0.03125, %v1215_v59 }
0x1b34   :  { %v1233_v61 = vmul.f32 %v1231_v60, %v1231_v60 }
0x1b36   :  { %1235 = vrot.lane.b32.xlu1 %v1233_v61, %s2808_s7 }
0x1ba1   :  { %v1224_v62 = vpop.permute.xlu1 %1223 }
0x1ba2   :  { %v1225_v63 = vsel %vm1178_vm15, %v1224_v62, %v1218_v53 }
0x1ba3   :  { %1227 = vrot.lane.b32.xlu0 %v1225_v63, %s2810_s9 }
0x1ba8   :  { %v1236_v48 = vpop.permute.xlu1 %1235 }
0x1c15   :  { %v1228_v3 = vpop.permute.xlu0 %1227 }
0x1c16   :  { %v1230_v5 = vadd.f32 %v1228_v3, %v1204_v49 }
0x1c18   :  { %v1232_v45 = vmul.f32 0.03125, %v1230_v5  ;;  %v2681_v5 = vld [vmem:[#allocation5 + $0x234] ss:$12 sps:$4 sm:$0xff]  }
0x1c19   :  { %2515 = vmatpush3.bf16.msra.mxu1 %v2681_v5 }
0x1c1a   :  { %v1238_v6 = vsub.f32 %v1232_v45, %v1236_v48  ;;  %2516 = vmatprep.subr.bf16.mxu1 %v2800_v4  ;;  %v2682_v45 = vld [vmem:[#allocation5 + $0x21c] ss:$12 sps:$4 sm:$0xff]  }
0x1c1c   :  { %v1239_v7 = vmax.f32 %v1238_v6, 0.0  ;;  %v846_v6 = vld [vmem:[#allocation7 + $0xc] sm:$0x1] }
0x1c1d   :  { %2517 = vmatpush3.bf16.msra.mxu1 %v2682_v45  ;;  %v2685_v45 = vld [vmem:[#allocation5 + $0x2a0] ss:$12 sps:$4 sm:$0xff]  }
0x1c1e   :  { %v1240_v8 = vadd.f32 1e-05, %v1239_v7  ;;  %2522 = vmatprep.subr.bf16.mxu1 %v2800_v4 }
0x1c20   :  { %2694 = vrsqrt.f32 %v1240_v8 }
0x1c2d   :  { %v2695_v9 = vpop.eup %2694 }
0x1c2e   :  { %1243 = vrot.lane.b32.xlu0 %v2695_v9, %s2807_s6  ;;  %v847_v9 = vld [vmem:[#allocation7 + $0xd] sm:$0x1] }
0x1ca0   :  { %v1244_v12 = vpop.permute.xlu0 %1243 }
0x1ca1   :  { %v1246_v13 = vmul.f32 %v1244_v12, %v844_v10 }
0x1ca3   :  { %v1247_v16 = vmul.f32 %v1246_v13, %v1231_v60  ;;  %v1252_v17 = vrot.slane %v1246_v13, %v2961_v52 }
0x1ca5   :  { %v1248_v18 = vsub.f32 %v845_v15, %v1247_v16  ;;  %v1253_v19 = vmul.f32 %v1252_v17, %v3113_v25 }
0x1ca7   :  { %v1257_v20 = vrot.slane %v1248_v18, %v2961_v52 }
0x1ca9   :  { %v1258_v21 = vadd.f32 %v1257_v20, %v1253_v19  ;;  %v1419_v19 = vand.u32 3, %v2849_v11 }
0x1cab   :  { %v3148_v22 = vmax.f32 %v1258_v21, 0.0  ;;  %vm3189_vm1 = vcmp.eq.s32.totalorder %v1419_v19, 0  ;;  %vm3198_vm2 = vcmp.eq.s32.totalorder %v1419_v19, 3 }
0x1cad   :  { %v1260_v23 = vmul.f32 %v3148_v22, %v3148_v22 }
0x1caf   :  { %1262 = vrot.lane.b32.xlu1 %v1260_v23, %s2808_s7 }
0x1d21   :  { %v1263_v24 = vpop.permute.xlu1 %1262 }
0x1d22   :  { %v1265_v26 = vsel %vm306_vm8, %v3148_v22, %v1263_v24 }
0x1d23   :  { %v1266_v27 = vsel %vm451_vm9, %v1265_v26, 0.0 }
0x1d24   :  { %v1267_v28 = vrot.slane %v1266_v27, 4 }
0x1d26   :  { %v1268_v29 = vadd.f32 %v1267_v28, %v1266_v27  ;;  %v2395_v27 = vld [vmem:[#allocation7 + $0x9] ss:$0 sm:$0xff] }
0x1d28   :  { %v1269_v30 = vrot.slane %v1268_v29, 2 }
0x1d2a   :  { %v1270_v25 = vadd.f32 %v1269_v30, %v1268_v29  ;;  %v2683_v29 = vld [vmem:[#allocation5 + $0x264] ss:$12 sps:$4 sm:$0xff]   ;;  %v2684_v30 = vld [vmem:[#allocation5 + $0x24c] ss:$12 sps:$4 sm:$0xff]  }
0x1d2c   :  { %v1271_v31 = vrot.slane %v1270_v25, 1 }
0x1d2e   :  { %v1272_v32 = vadd.f32 %v1271_v31, %v1270_v25 }
0x1d30   :  { %1273 = vrot.lane.b32.xlu1 %v1272_v32, %s2808_s7  ;;  %1285 = vrot.lane.b32.xlu0 %v1272_v32, %s2807_s6 }
0x1da2   :  { %v1274_v33 = vpop.permute.xlu1 %1273  ;;  %v1286_v1 = vpop.permute.xlu0 %1285 }
0x1da3   :  { %1288 = vrot.lane.b32.xlu0 %v1286_v1, %s2808_s7  ;;  %v1275_v2 = vsel %vm1178_vm15, %v1274_v33, %v1272_v32 }
0x1da4   :  { %1276 = vrot.lane.b32.xlu1 %v1275_v2, %s2808_s7 }
0x1e15   :  { %v1289_v34 = vpop.permute.xlu0 %1288 }
0x1e16   :  { %v1277_v35 = vpop.permute.xlu1 %1276  ;;  %v1290_v36 = vsel %vm1178_vm15, %v1289_v34, %v1286_v1 }
0x1e17   :  { %1291 = vrot.lane.b32.xlu0 %v1290_v36, %s2808_s7  ;;  %v1278_v0 = vsel %vm1178_vm15, %v1277_v35, %v1272_v32 }
0x1e18   :  { %1280 = vrot.lane.b32.xlu1 %v1278_v0, %s2802_s0 }
0x1e89   :  { %v1292_v37 = vpop.permute.xlu0 %1291 }
0x1e8a   :  { %v1281_v14 = vpop.permute.xlu1 %1280  ;;  %v1293_v38 = vsel %vm1178_vm15, %v1292_v37, %v1286_v1 }
0x1e8b   :  { %v1283_v39 = vadd.f32 %v1281_v14, %v1272_v32  ;;  %1295 = vrot.lane.b32.xlu0 %v1293_v38, %s2809_s8 }
0x1e8d   :  { %1299 = vrot.lane.b32.xlu1 %v1283_v39, %s2808_s7 }
0x1efd   :  { %v1296_v40 = vpop.permute.xlu0 %1295 }
0x1efe   :  { %v1298_v41 = vadd.f32 %v1296_v40, %v1272_v32 }
0x1eff   :  { %v1300_v42 = vpop.permute.xlu1 %1299 }
0x1f00   :  { %1311 = vrot.lane.b32.xlu0 %v1298_v41, %s2807_s6  ;;  %v1301_v43 = vsel %vm1178_vm15, %v1300_v42, %v1283_v39 }
0x1f01   :  { %1302 = vrot.lane.b32.xlu1 %v1301_v43, %s2808_s7  ;;  %v2399_v43 = vld [vmem:[#allocation7 + $0x10] ss:$0 sm:$0xff] }
0x1f72   :  { %v1312_v44 = vpop.permute.xlu0 %1311 }
0x1f73   :  { %v1303_v46 = vpop.permute.xlu1 %1302  ;;  %1314 = vrot.lane.b32.xlu0 %v1312_v44, %s2808_s7 }
0x1f74   :  { %v1304_v47 = vsel %vm1178_vm15, %v1303_v46, %v1283_v39 }
0x1f75   :  { %1306 = vrot.lane.b32.xlu1 %v1304_v47, %s2805_s4 }
0x1fe5   :  { %v1315_v49 = vpop.permute.xlu0 %1314 }
0x1fe6   :  { %v1316_v50 = vsel %vm1178_vm15, %v1315_v49, %v1312_v44 }
0x1fe7   :  { %v1307_v51 = vpop.permute.xlu1 %1306  ;;  %1317 = vrot.lane.b32.xlu0 %v1316_v50, %s2808_s7 }
0x1fe8   :  { %v1309_v53 = vadd.f32 %v1307_v51, %v1283_v39 }
0x1fea   :  { %v1325_v54 = vmul.f32 0.03125, %v1309_v53 }
0x1fec   :  { %v1327_v55 = vmul.f32 %v1325_v54, %v1325_v54 }
0x1fee   :  { %1329 = vrot.lane.b32.xlu0 %v1327_v55, %s2808_s7 }
0x2059   :  { %v1318_v56 = vpop.permute.xlu0 %1317 }
0x205a   :  { %v1319_v57 = vsel %vm1178_vm15, %v1318_v56, %v1312_v44 }
0x205b   :  { %1321 = vrot.lane.b32.xlu1 %v1319_v57, %s2810_s9 }
0x2060   :  { %v1330_v61 = vpop.permute.xlu0 %1329 }
0x20cd   :  { %v1322_v58 = vpop.permute.xlu1 %1321 }
0x20ce   :  { %v1324_v59 = vadd.f32 %v1322_v58, %v1298_v41 }
0x20d0   :  { %v1326_v60 = vmul.f32 0.03125, %v1324_v59 }
0x20d2   :  { %v1332_v62 = vsub.f32 %v1326_v60, %v1330_v61 }
0x20d4   :  { %v1333_v63 = vmax.f32 %v1332_v62, 0.0 }
0x20d6   :  { %v1334_v3 = vadd.f32 1e-05, %v1333_v63 }
0x20d8   :  { %2696 = vrsqrt.f32 %v1334_v3 }
0x20e5   :  { %v2697_v48 = vpop.eup %2696 }
0x20e6   :  { %1337 = vrot.lane.b32.xlu1 %v2697_v48, %s2807_s6 }
0x2158   :  { %v1338_v7 = vpop.permute.xlu1 %1337 }
0x2159   :  { %v1340_v8 = vmul.f32 %v1338_v7, %v846_v6 }
0x215b   :  { %v1341_v10 = vmul.f32 %v1340_v8, %v1325_v54  ;;  %v1346_v12 = vrot.slane %v1340_v8, %v2961_v52 }
0x215d   :  { %v1342_v13 = vsub.f32 %v847_v9, %v1341_v10  ;;  %v1347_v15 = vmul.f32 %v1346_v12, %v3148_v22  ;;  %v1539_v10 = vld [vmem:[#allocation5 + $0x27c] sm:$0x3]  ;;  %v2686_v12 = vld [vmem:[#allocation5 + $0x288] ss:$12 sps:$4 sm:$0xff]  }
0x215f   :  { %v1351_v16 = vrot.slane %v1342_v13, %v2961_v52 }
0x2161   :  { %v1352_v17 = vadd.f32 %v1351_v16, %v1347_v15 }
0x2163   :  { %v1357_v18 = vpack.c.bf16 %v1352_v17, %v1352_v17 }
0x2165   :  { %2519 = vmatmul.mubr.msk.bf16.vlgmr.msra.gmra.mxu1 %vm306_vm8, %v1357_v18 }
0x2166   :  { %2526 = vmatprep.mubr.msk.bf16.mxu1 %vm2801_vm7, %v2800_v4  ;;  %2523 = vmatpush3.bf16.msra.mxu1 %v2683_v29 }
0x2167   :  { %2524 = vmatprep.subr.bf16.mxu1 %v2800_v4 }
0x216a   :  { %2525 = vmatpush3.bf16.msra.mxu1 %v2684_v30 }
0x216b   :  { %2536 = vmatprep.subr.bf16.mxu1 %v2800_v4 }
0x2225   :  { %v1407_v20 = vpop.f32.mrf.mxu1 }
0x2226   :  { %v1413_v23 = vrot.slane %v1407_v20, 7  ;;  %1415 = vrot.lane.b32.xlu0 %v1407_v20, %s2803_s2 }
0x2227   :  { %v2520_v22 = vpop.f32.mrf.mxu1 }
0x2228   :  { %v1421_v24 = vsel %vm3189_vm1, 0.0, %v1413_v23 }
0x2229   :  { %1425 = vrot.lane.b32.xlu1 %v1421_v24, %s2808_s7  ;;  %v1410_v26 = vpop.f32.mrf.mxu1 }
0x222b   :  { %v2521_v28 = vpop.f32.mrf.mxu1 }
0x222d   :  { %1439 = vrot.lane.b32.xlu1 %v2395_v27, %s2808_s7 }
0x2298   :  { %v1416_v31 = vpop.permute.xlu0 %1415 }
0x2299   :  { %v1418_v32 = vrot.slane %v1416_v31, 1 }
0x229b   :  { %v1423_v33 = vsel %vm3198_vm2, 0.0, %v1418_v32  ;;  %v1426_v1 = vpop.permute.xlu1 %1425 }
0x229c   :  { %1430 = vrot.lane.b32.xlu0 %v1423_v33, %s2808_s7  ;;  %v1428_v2 = vadd.f32 %v1426_v1, %v1407_v20 }
0x229f   :  { %v1440_v35 = vpop.permute.xlu1 %1439 }
0x230e   :  { %v1431_v34 = vpop.permute.xlu0 %1430 }
0x230f   :  { %v1433_v36 = vadd.f32 %v1431_v34, %v1428_v2 }
0x2311   :  { %v1442_v0 = vadd.f32 %v1440_v35, %v1433_v36 }
0x2313   :  { %v1453_v37 = vpack.c.bf16 %v1442_v0, %v1442_v0 }
0x2315   :  { %1455 = vrot.lane.b32.xlu0 %v1453_v37, %s2807_s6 }
0x2387   :  { %v1456_v14 = vpop.permute.xlu0 %1455 }
0x2388   :  { %2527 = vmatmul.mubr.msk.bf16.vlgmr.msra.gmra.mxu1 %vm306_vm8, %v1456_v14 }
0x2389   :  { %2540 = vmatprep.mubr.msk.bf16.mxu1 %vm2801_vm7, %v2800_v4  ;;  %2537 = vmatpush3.bf16.msra.mxu1 %v2685_v45 }
0x238a   :  { %2538 = vmatprep.subr.bf16.mxu1 %v2800_v4 }
0x238d   :  { %2539 = vmatpush3.bf16.msra.mxu1 %v2686_v12 }
0x238e   :  { %2550 = vmatprep.subr.bf16.mxu1 %v2800_v4 }
0x2448   :  { %v1506_v38 = vpop.f32.mrf.mxu1 }
0x2449   :  { %v1512_v39 = vrot.slane %v1506_v38, 7  ;;  %1514 = vrot.lane.b32.xlu1 %v1506_v38, %s2803_s2 }
0x244a   :  { %v2528_v40 = vpop.f32.mrf.mxu1 }
0x244b   :  { %v1518_v41 = vsel %vm3189_vm1, 0.0, %v1512_v39 }
0x244c   :  { %1521 = vrot.lane.b32.xlu0 %v1518_v41, %s2808_s7  ;;  %v1509_v42 = vpop.f32.mrf.mxu1 }
0x244e   :  { %v2529_v44 = vpop.f32.mrf.mxu1 }
0x2450   :  { %1535 = vrot.lane.b32.xlu0 %v2399_v43, %s2808_s7 }
0x24bb   :  { %v1515_v46 = vpop.permute.xlu1 %1514 }
0x24bc   :  { %v1517_v47 = vrot.slane %v1515_v46, 1 }
0x24be   :  { %v1519_v49 = vsel %vm3198_vm2, 0.0, %v1517_v47  ;;  %v1522_v50 = vpop.permute.xlu0 %1521 }
0x24bf   :  { %1526 = vrot.lane.b32.xlu1 %v1519_v49, %s2808_s7  ;;  %v1524_v51 = vadd.f32 %v1522_v50, %v1506_v38 }
0x24c2   :  { %v1536_v54 = vpop.permute.xlu0 %1535 }
0x2531   :  { %v1527_v53 = vpop.permute.xlu1 %1526 }
0x2532   :  { %v1529_v55 = vadd.f32 %v1527_v53, %v1524_v51  ;;  %v1445_v53 = vld [vmem:[#allocation7 + $0x12] sm:$0x1] }
0x2534   :  { %v1538_v56 = vadd.f32 %v1536_v54, %v1529_v55 }
0x2536   :  { %1545 = vrot.lane.b32.xlu1 %v1538_v56, %s2807_s6 }
0x25a8   :  { %v1546_v57 = vpop.permute.xlu1 %1545 }
0x25a9   :  { %v1548_v58 = vrot.slane %v1546_v57, 1 }
0x25ab   :  { %1550 = vrot.lane.b32.xlu0 %v1548_v58, %s2808_s7 }
0x261d   :  { %v1551_v59 = vpop.permute.xlu0 %1550 }
0x261e   :  { %v1553_v60 = vmax.f32 %v1538_v56, %v1551_v59  ;;  %v1446_v56 = vld [vmem:[#allocation7 + $0x13] sm:$0x1] }
0x2620   :  { %1555 = vrot.lane.b32.xlu1 %v1553_v60, %s2807_s6 }
0x2692   :  { %v1556_v61 = vpop.permute.xlu1 %1555 }
0x2693   :  { %1558 = vrot.lane.b32.xlu0 %v1556_v61, %s2808_s7 }
0x2705   :  { %v1559_v62 = vpop.permute.xlu0 %1558 }
0x2706   :  { %v1560_v63 = vsel %vm1178_vm15, %v1559_v62, %v1556_v61 }
0x2707   :  { %1561 = vrot.lane.b32.xlu1 %v1560_v63, %s2808_s7 }
0x2779   :  { %v1562_v3 = vpop.permute.xlu1 %1561 }
0x277a   :  { %v1563_v5 = vsel %vm1178_vm15, %v1562_v3, %v1556_v61 }
0x277b   :  { %1565 = vrot.lane.b32.xlu0 %v1563_v5, %s2809_s8 }
0x27ed   :  { %v1566_v48 = vpop.permute.xlu0 %1565 }
0x27ee   :  { %v1568_v6 = vmax.f32 %v1553_v60, %v1566_v48 }
0x27f0   :  { %v1569_v7 = vpack.c.bf16 %v1568_v6, %v1568_v6 }
0x27f2   :  { %1571 = vrot.lane.b32.xlu1 %v1569_v7, %s2807_s6 }
0x2864   :  { %v1572_v8 = vpop.permute.xlu1 %1571 }
0x2865   :  { %v1579_v9 = vsel %vm1577_vm3, %v1572_v8, 0 }
0x2866   :  { %2531 = vmatpush3.bf16.msra.mxu0 %v1579_v9 }
0x2867   :  { %2544 = vmatprep.subr.bf16.mxu0 %v2800_v4 }
0x2869   :  { %2533 = vmatmul.mubr.msk.bf16.vlgmr.msra.gmra.mxu0 %vm1573_vm4, %v1539_v10 }
0x286a   :  { %2546 = vmatprep.mubr.msk.bf16.mxu0 %vm2801_vm7, %v2800_v4 }
0x2929   :  { %v1615_v13 = vpop.f32.mrf.mxu0 }
0x292a   :  { %v1621_v15 = vpack.c.bf16 %v1615_v13, %v1615_v13 }
0x292b   :  { %v2534_v16 = vpop.f32.mrf.mxu0 }
0x292c   :  { %2541 = vmatmul.mubr.msk.bf16.vlgmr.msra.gmra.mxu1 %vm306_vm8, %v1621_v15  ;;  %vm1866_vm8 = vcmask 1047556  }
0x292d   :  { %v1618_v17 = vpop.f32.mrf.mxu0  ;;  %2552 = vmatprep.mubr.msk.bf16.mxu1 %vm2801_vm7, %v2800_v4 }
0x292f   :  { %v2535_v18 = vpop.f32.mrf.mxu0 }
0x29ec   :  { %v1671_v19 = vpop.f32.mrf.mxu1 }
0x29ed   :  { %v1677_v20 = vmul.f32 %v1671_v19, %v1671_v19 }
0x29ee   :  { %v2542_v21 = vpop.f32.mrf.mxu1 }
0x29ef   :  { %1679 = vrot.lane.b32.xlu0 %v1677_v20, %s2810_s9 }
0x29f0   :  { %v1674_v23 = vpop.f32.mrf.mxu1 }
0x29f2   :  { %v2543_v22 = vpop.f32.mrf.mxu1 }
0x2a61   :  { %v1680_v24 = vpop.permute.xlu0 %1679 }
0x2a62   :  { %v1682_v26 = vsel %vm89_vm0, %v1671_v19, %v1680_v24 }
0x2a63   :  { %v1684_v27 = vsel %vm1683_vm5, %v1682_v26, 0.0 }
0x2a64   :  { %v1685_v28 = vrot.slane %v1684_v27, 4 }
0x2a66   :  { %v1686_v29 = vadd.f32 %v1685_v28, %v1684_v27 }
0x2a68   :  { %v1687_v30 = vrot.slane %v1686_v29, 2 }
0x2a6a   :  { %v1688_v25 = vadd.f32 %v1687_v30, %v1686_v29 }
0x2a6c   :  { %v1689_v31 = vrot.slane %v1688_v25, 1 }
0x2a6e   :  { %v1690_v32 = vadd.f32 %v1689_v31, %v1688_v25 }
0x2a70   :  { %1704 = vrot.lane.b32.xlu0 %v1690_v32, %s2805_s4  ;;  %1692 = vrot.lane.b32.xlu1 %v1690_v32, %s2810_s9 }
0x2ae2   :  { %v1705_v33 = vpop.permute.xlu0 %1704  ;;  %v1693_v1 = vpop.permute.xlu1 %1692 }
0x2ae3   :  { %v1694_v2 = vsel %vm1691_vm6, %v1693_v1, %v1690_v32  ;;  %1707 = vrot.lane.b32.xlu0 %v1705_v33, %s2810_s9  ;;  %v2687_v1 = vld [vmem:[#allocation5 + $0x2b8] ss:$12 sps:$4 sm:$0xff]  }
0x2ae4   :  { %1695 = vrot.lane.b32.xlu1 %v1694_v2, %s2810_s9  ;;  %2545 = vmatpush3.bf16.msra.mxu0 %v2687_v1 }
0x2ae5   :  { %2556 = vmatprep.subr.bf16.mxu0 %v2800_v4 }
0x2b55   :  { %v1708_v34 = vpop.permute.xlu0 %1707 }
0x2b56   :  { %v1709_v35 = vsel %vm1691_vm6, %v1708_v34, %v1705_v33  ;;  %v1696_v36 = vpop.permute.xlu1 %1695  ;;  %v1447_v34 = vld [vmem:[#allocation7 + $0x14] sm:$0x1] }
0x2b57   :  { %v1697_v0 = vsel %vm1691_vm6, %v1696_v36, %v1690_v32  ;;  %1710 = vrot.lane.b32.xlu0 %v1709_v35, %s2810_s9 }
0x2b58   :  { %1699 = vrot.lane.b32.xlu1 %v1697_v0, %s2802_s0  ;;  %v1448_v0 = vld [vmem:[#allocation7 + $0x15] sm:$0x1] }
0x2bc9   :  { %v1711_v37 = vpop.permute.xlu0 %1710 }
0x2bca   :  { %v1700_v14 = vpop.permute.xlu1 %1699  ;;  %v1712_v38 = vsel %vm1691_vm6, %v1711_v37, %v1705_v33 }
0x2bcb   :  { %v1702_v39 = vadd.f32 %v1700_v14, %v1690_v32  ;;  %1714 = vrot.lane.b32.xlu1 %v1712_v38, %s2797_s23 }
0x2bcd   :  { %v1718_v40 = vmul.f32 0.125, %v1702_v39 }
0x2bcf   :  { %v1720_v41 = vmul.f32 %v1718_v40, %v1718_v40 }
0x2bd1   :  { %1722 = vrot.lane.b32.xlu0 %v1720_v41, %s2810_s9 }
0x2c3d   :  { %v1715_v42 = vpop.permute.xlu1 %1714 }
0x2c3e   :  { %v1717_v43 = vadd.f32 %v1715_v42, %v1690_v32 }
0x2c40   :  { %v1719_v44 = vmul.f32 0.125, %v1717_v43 }
0x2c43   :  { %v1723_v46 = vpop.permute.xlu0 %1722 }
0x2c44   :  { %v1725_v47 = vsub.f32 %v1719_v44, %v1723_v46 }
0x2c46   :  { %v1726_v49 = vmax.f32 %v1725_v47, 0.0  ;;  %v1879_v47 = vand.u32 1, %v2849_v11 }
0x2c48   :  { %v1727_v50 = vadd.f32 1e-05, %v1726_v49  ;;  %vm3282_vm9 = vcmp.eq.s32.totalorder %v1879_v47, 0  ;;  %vm3292_vm10 = vcmp.eq.s32.totalorder %v1879_v47, 1 }
0x2c4a   :  { %2698 = vrsqrt.f32 %v1727_v50 }
0x2c57   :  { %v2699_v51 = vpop.eup %2698 }
0x2c58   :  { %1730 = vrot.lane.b32.xlu1 %v2699_v51, %s2805_s4 }
0x2cca   :  { %v1731_v54 = vpop.permute.xlu1 %1730 }
0x2ccb   :  { %v1733_v55 = vmul.f32 %v1731_v54, %v1445_v53 }
0x2ccd   :  { %v1734_v57 = vmul.f32 %v1733_v55, %v1718_v40  ;;  %v1739_v58 = vrot.slane %v1733_v55, %v2961_v52 }
0x2ccf   :  { %v1735_v59 = vsub.f32 %v1446_v56, %v1734_v57  ;;  %v1740_v60 = vmul.f32 %v1739_v58, %v1671_v19  ;;  %v2406_v58 = vld [vmem:[#allocation7 + $0x11] ss:$0 sm:$0xff] }
0x2cd1   :  { %v1744_v61 = vrot.slane %v1735_v59, %v2961_v52 }
0x2cd3   :  { %v1745_v62 = vadd.f32 %v1744_v61, %v1740_v60  ;;  %v2688_v61 = vld [vmem:[#allocation5 + $0x2d0] ss:$12 sps:$4 sm:$0xff]  }
0x2cd4   :  { %2551 = vmatpush3.bf16.msra.mxu1 %v2688_v61 }
0x2cd5   :  { %v1746_v63 = vmax.f32 %v1745_v62, 0.0  ;;  %2562 = vmatprep.subr.bf16.mxu1 %v2800_v4 }
0x2cd7   :  { %v1747_v3 = vmul.f32 %v1746_v63, %v1746_v63 }
0x2cd9   :  { %1749 = vrot.lane.b32.xlu0 %v1747_v3, %s2810_s9 }
0x2d4b   :  { %v1750_v5 = vpop.permute.xlu0 %1749 }
0x2d4c   :  { %v1752_v45 = vsel %vm89_vm0, %v1746_v63, %v1750_v5 }
0x2d4d   :  { %v1753_v48 = vsel %vm1683_vm5, %v1752_v45, 0.0 }
0x2d4e   :  { %v1754_v6 = vrot.slane %v1753_v48, 4 }
0x2d50   :  { %v1755_v7 = vadd.f32 %v1754_v6, %v1753_v48 }
0x2d52   :  { %v1756_v8 = vrot.slane %v1755_v7, 2 }
0x2d54   :  { %v1757_v9 = vadd.f32 %v1756_v8, %v1755_v7 }
0x2d56   :  { %v1758_v10 = vrot.slane %v1757_v9, 1 }
0x2d58   :  { %v1759_v12 = vadd.f32 %v1758_v10, %v1757_v9 }
0x2d5a   :  { %1772 = vrot.lane.b32.xlu0 %v1759_v12, %s2805_s4  ;;  %1760 = vrot.lane.b32.xlu1 %v1759_v12, %s2810_s9 }
0x2dcc   :  { %v1773_v13 = vpop.permute.xlu0 %1772  ;;  %v1761_v15 = vpop.permute.xlu1 %1760 }
0x2dcd   :  { %v1762_v16 = vsel %vm1691_vm6, %v1761_v15, %v1759_v12  ;;  %1775 = vrot.lane.b32.xlu0 %v1773_v13, %s2810_s9 }
0x2dce   :  { %1763 = vrot.lane.b32.xlu1 %v1762_v16, %s2810_s9 }
0x2e3f   :  { %v1776_v17 = vpop.permute.xlu0 %1775 }
0x2e40   :  { %v1777_v18 = vsel %vm1691_vm6, %v1776_v17, %v1773_v13  ;;  %v1764_v19 = vpop.permute.xlu1 %1763 }
0x2e41   :  { %v1765_v20 = vsel %vm1691_vm6, %v1764_v19, %v1759_v12  ;;  %1778 = vrot.lane.b32.xlu0 %v1777_v18, %s2810_s9 }
0x2e42   :  { %1767 = vrot.lane.b32.xlu1 %v1765_v20, %s2802_s0 }
0x2eb3   :  { %v1779_v21 = vpop.permute.xlu0 %1778 }
0x2eb4   :  { %v1768_v23 = vpop.permute.xlu1 %1767  ;;  %v1780_v22 = vsel %vm1691_vm6, %v1779_v21, %v1773_v13 }
0x2eb5   :  { %v1770_v24 = vadd.f32 %v1768_v23, %v1759_v12  ;;  %1782 = vrot.lane.b32.xlu1 %v1780_v22, %s2797_s23 }
0x2eb7   :  { %v1786_v26 = vmul.f32 0.125, %v1770_v24 }
0x2eb9   :  { %v1788_v27 = vmul.f32 %v1786_v26, %v1786_v26 }
0x2ebb   :  { %1790 = vrot.lane.b32.xlu0 %v1788_v27, %s2810_s9 }
0x2f27   :  { %v1783_v28 = vpop.permute.xlu1 %1782 }
0x2f28   :  { %v1785_v29 = vadd.f32 %v1783_v28, %v1759_v12 }
0x2f2a   :  { %v1787_v30 = vmul.f32 0.125, %v1785_v29 }
0x2f2d   :  { %v1791_v25 = vpop.permute.xlu0 %1790 }
0x2f2e   :  { %v1793_v31 = vsub.f32 %v1787_v30, %v1791_v25 }
0x2f30   :  { %v1794_v32 = vmax.f32 %v1793_v31, 0.0 }
0x2f32   :  { %v1795_v33 = vadd.f32 1e-05, %v1794_v32 }
0x2f34   :  { %2700 = vrsqrt.f32 %v1795_v33 }
0x2f41   :  { %v2701_v2 = vpop.eup %2700 }
0x2f42   :  { %1798 = vrot.lane.b32.xlu1 %v2701_v2, %s2805_s4 }
0x2fb4   :  { %v1799_v35 = vpop.permute.xlu1 %1798 }
0x2fb5   :  { %v1801_v36 = vmul.f32 %v1799_v35, %v1447_v34 }
0x2fb7   :  { %v1802_v37 = vmul.f32 %v1801_v36, %v1786_v26  ;;  %v1807_v14 = vrot.slane %v1801_v36, %v2961_v52  ;;  %v2409_v26 = vld [vmem:[#allocation7 + $0x18] ss:$0 sm:$0xff] }
0x2fb9   :  { %v1803_v38 = vsub.f32 %v1448_v0, %v1802_v37  ;;  %v1808_v39 = vmul.f32 %v1807_v14, %v1746_v63 }
0x2fbb   :  { %v1812_v40 = vrot.slane %v1803_v38, %v2961_v52 }
0x2fbd   :  { %v1813_v41 = vadd.f32 %v1812_v40, %v1808_v39 }
0x2fbf   :  { %v1816_v42 = vpack.c.bf16 %v1813_v41, %v1813_v41 }
0x2fc1   :  { %2547 = vmatmul.mubr.msk.bf16.vlgmr.msra.gmra.mxu0 %vm89_vm0, %v1816_v42 }
0x2fc2   :  { %2558 = vmatprep.mubr.msk.bf16.mxu0 %vm2801_vm7, %v2800_v4 }
0x3081   :  { %v1860_v43 = vpop.f32.mrf.mxu0 }
0x3082   :  { %v1867_v44 = vrot.slane %v1860_v43, 4  ;;  %1872 = vrot.lane.b32.xlu0 %v1860_v43, %s2807_s6 }
0x3083   :  { %v2548_v46 = vpop.f32.mrf.mxu0 }
0x3084   :  { %v1868_v49 = vsel %vm1866_vm8, %v1867_v44, %v1860_v43 }
0x3085   :  { %v1869_v50 = vrot.slane %v1868_v49, 4  ;;  %v1863_v51 = vpop.f32.mrf.mxu0 }
0x3087   :  { %v2549_v53 = vpop.f32.mrf.mxu0  ;;  %v1870_v54 = vsel %vm1866_vm8, %v1869_v50, %v1860_v43 }
0x3088   :  { %v1882_v56 = vrot.slane %v1870_v54, 3 }
0x308a   :  { %v1884_v57 = vsel %vm3282_vm9, 0.0, %v1882_v56  ;;  %v2009_v56 = vld [vmem:[#allocation5 + $0x2e8] sm:$0x1] }
0x308b   :  { %1891 = vrot.lane.b32.xlu1 %v1884_v57, %s2810_s9  ;;  %v2689_v57 = vld [vmem:[#allocation5 + $0x2f4] ss:$12 sps:$4 sm:$0xff]  }
0x308f   :  { %1905 = vrot.lane.b32.xlu1 %v2406_v58, %s2810_s9 }
0x30f4   :  { %v1873_v11 = vpop.permute.xlu0 %1872 }
0x30f5   :  { %v1875_v59 = vrot.slane %v1873_v11, 4 }
0x30f7   :  { %v1876_v60 = vsel %vm1866_vm8, %v1875_v59, %v1873_v11 }
0x30f8   :  { %v1877_v62 = vrot.slane %v1876_v60, 4 }
0x30fa   :  { %v1878_v63 = vsel %vm1866_vm8, %v1877_v62, %v1873_v11 }
0x30fb   :  { %v1887_v5 = vrot.slane %v1878_v63, 1 }
0x30fd   :  { %v1889_v45 = vsel %vm3292_vm10, 0.0, %v1887_v5  ;;  %v1892_v48 = vpop.permute.xlu1 %1891 }
0x30fe   :  { %1896 = vrot.lane.b32.xlu0 %v1889_v45, %s2810_s9  ;;  %v1894_v6 = vadd.f32 %v1892_v48, %v1860_v43 }
0x3101   :  { %v1906_v8 = vpop.permute.xlu1 %1905 }
0x3170   :  { %v1897_v7 = vpop.permute.xlu0 %1896 }
0x3171   :  { %v1899_v9 = vadd.f32 %v1897_v7, %v1894_v6 }
0x3173   :  { %v1908_v10 = vadd.f32 %v1906_v8, %v1899_v9 }
0x3175   :  { %v1917_v12 = vpack.c.bf16 %v1908_v10, %v1908_v10 }
0x3177   :  { %1919 = vrot.lane.b32.xlu0 %v1917_v12, %s2805_s4 }
0x31e9   :  { %v1920_v13 = vpop.permute.xlu0 %1919 }
0x31ea   :  { %2553 = vmatmul.mubr.msk.bf16.vlgmr.msra.gmra.mxu1 %vm89_vm0, %v1920_v13 }
0x31eb   :  { %2564 = vmatprep.mubr.msk.bf16.mxu1 %vm2801_vm7, %v2800_v4  ;;  %2563 = vmatpush3.bf16.msra.mxu1 %v2689_v57 }
0x31ec   :  { %2574 = vmatprep.subr.bf16.mxu1 %v2800_v4 }
0x32aa   :  { %v1964_v15 = vpop.f32.mrf.mxu1 }
0x32ab   :  { %v1970_v16 = vrot.slane %v1964_v15, 4  ;;  %1975 = vrot.lane.b32.xlu1 %v1964_v15, %s2807_s6 }
0x32ac   :  { %v2554_v17 = vpop.f32.mrf.mxu1 }
0x32ad   :  { %v1971_v18 = vsel %vm1866_vm8, %v1970_v16, %v1964_v15 }
0x32ae   :  { %v1972_v19 = vrot.slane %v1971_v18, 4  ;;  %v1967_v20 = vpop.f32.mrf.mxu1 }
0x32b0   :  { %v2555_v21 = vpop.f32.mrf.mxu1  ;;  %v1973_v23 = vsel %vm1866_vm8, %v1972_v19, %v1964_v15 }
0x32b1   :  { %v1983_v22 = vrot.slane %v1973_v23, 3  ;;  %v1911_v23 = vld [vmem:[#allocation7 + $0x1a] sm:$0x1] }
0x32b3   :  { %v1985_v24 = vsel %vm3282_vm9, 0.0, %v1983_v22 }
0x32b4   :  { %1991 = vrot.lane.b32.xlu0 %v1985_v24, %s2810_s9 }
0x32b8   :  { %2005 = vrot.lane.b32.xlu0 %v2409_v26, %s2810_s9  ;;  %v1912_v26 = vld [vmem:[#allocation7 + $0x1b] sm:$0x1] }
0x331d   :  { %v1976_v27 = vpop.permute.xlu1 %1975 }
0x331e   :  { %v1978_v28 = vrot.slane %v1976_v27, 4 }
0x3320   :  { %v1979_v29 = vsel %vm1866_vm8, %v1978_v28, %v1976_v27 }
0x3321   :  { %v1980_v30 = vrot.slane %v1979_v29, 4 }
0x3323   :  { %v1981_v25 = vsel %vm1866_vm8, %v1980_v30, %v1976_v27 }
0x3324   :  { %v1987_v31 = vrot.slane %v1981_v25, 1 }
0x3326   :  { %v1989_v32 = vsel %vm3292_vm10, 0.0, %v1987_v31  ;;  %v1992_v33 = vpop.permute.xlu0 %1991 }
0x3327   :  { %1996 = vrot.lane.b32.xlu1 %v1989_v32, %s2810_s9  ;;  %v1994_v1 = vadd.f32 %v1992_v33, %v1964_v15 }
0x332a   :  { %v2006_v34 = vpop.permute.xlu0 %2005 }
0x3399   :  { %v1997_v2 = vpop.permute.xlu1 %1996 }
0x339a   :  { %v1999_v35 = vadd.f32 %v1997_v2, %v1994_v1 }
0x339c   :  { %v2008_v36 = vadd.f32 %v2006_v34, %v1999_v35 }
0x339e   :  { %2013 = vrot.lane.b32.xlu1 %v2008_v36, %s2805_s4 }
0x3410   :  { %v2014_v0 = vpop.permute.xlu1 %2013 }
0x3411   :  { %v2016_v37 = vrot.slane %v2014_v0, 4 }
0x3413   :  { %v2017_v14 = vsel %vm1866_vm8, %v2016_v37, %v2014_v0 }
0x3414   :  { %v2018_v38 = vrot.slane %v2017_v14, 4 }
0x3416   :  { %v2019_v39 = vsel %vm1866_vm8, %v2018_v38, %v2014_v0 }
0x3417   :  { %v2021_v40 = vrot.slane %v2019_v39, 1 }
0x3419   :  { %2022 = vrot.lane.b32.xlu0 %v2021_v40, %s2810_s9 }
0x348b   :  { %v2023_v41 = vpop.permute.xlu0 %2022 }
0x348c   :  { %v2025_v42 = vmax.f32 %v2008_v36, %v2023_v41 }
0x348e   :  { %2027 = vrot.lane.b32.xlu1 %v2025_v42, %s2805_s4 }
0x3500   :  { %v2028_v43 = vpop.permute.xlu1 %2027 }
0x3501   :  { %2030 = vrot.lane.b32.xlu0 %v2028_v43, %s2810_s9 }
0x3573   :  { %v2031_v44 = vpop.permute.xlu0 %2030 }
0x3574   :  { %v2032_v46 = vsel %vm1691_vm6, %v2031_v44, %v2028_v43 }
0x3575   :  { %2033 = vrot.lane.b32.xlu1 %v2032_v46, %s2810_s9  ;;  %v2225_v46 = vld [vmem:[#allocation5 + $0x30c] sm:$0xf] }
0x35e7   :  { %v2034_v47 = vpop.permute.xlu1 %2033 }
0x35e8   :  { %v2035_v49 = vsel %vm1691_vm6, %v2034_v47, %v2028_v43  ;;  %v2235_v47 = vsel %vm1577_vm3, %v2225_v46, 0 }
0x35e9   :  { %2037 = vrot.lane.b32.xlu0 %v2035_v49, %s2797_s23 }
0x365b   :  { %v2038_v50 = vpop.permute.xlu0 %2037 }
0x365c   :  { %v2040_v51 = vmax.f32 %v2025_v42, %v2038_v50  ;;  %v1913_v50 = vld [vmem:[#allocation7 + $0x1c] sm:$0x1] }
0x365e   :  { %v2041_v53 = vpack.c.bf16 %v2040_v51, %v2040_v51 }
0x3660   :  { %2043 = vrot.lane.b32.xlu1 %v2041_v53, %s2805_s4 }
0x36d2   :  { %v2044_v54 = vpop.permute.xlu1 %2043 }
0x36d3   :  { %v2051_v55 = vsel %vm2049_vm11, %v2044_v54, 0  ;;  %v1914_v54 = vld [vmem:[#allocation7 + $0x1d] sm:$0x1] }
0x36d4   :  { %2557 = vmatpush3.bf16.msra.mxu0 %v2051_v55 }
0x36d5   :  { %2568 = vmatprep.subr.bf16.mxu0 %v2800_v4 }
0x36d7   :  { %2559 = vmatmul.mubr.msk.bf16.vlgmr.msra.gmra.mxu0 %vm2045_vm12, %v2009_v56 }
0x36d8   :  { %2570 = vmatprep.mubr.msk.bf16.mxu0 %vm2801_vm7, %v2800_v4  ;;  %2569 = vmatpush3.bf16.msra.mxu0 %v2235_v47 }
0x3797   :  { %v2087_v58 = vpop.f32.mrf.mxu0 }
0x3798   :  { %v2093_v11 = vpack.c.bf16 %v2087_v58, %v2087_v58 }
0x3799   :  { %v2560_v59 = vpop.f32.mrf.mxu0 }
0x379a   :  { %2565 = vmatmul.mubr.msk.bf16.vlgmr.msra.gmra.mxu1 %vm89_vm0, %v2093_v11  ;;  %vm2330_vm0 = vcmask 33792  }
0x379b   :  { %v2090_v60 = vpop.f32.mrf.mxu0  ;;  %2576 = vmatprep.mubr.msk.bf16.mxu1 %vm2801_vm7, %v2800_v4 }
0x379d   :  { %v2561_v61 = vpop.f32.mrf.mxu0 }
0x379e   :  { %v2277_v61 = vld [vmem:[#allocation5 + $0x318] sm:$0xf] }
0x385a   :  { %v2137_v62 = vpop.f32.mrf.mxu1 }
0x385b   :  { %v2143_v63 = vmul.f32 %v2137_v62, %v2137_v62 }
0x385c   :  { %v2566_v3 = vpop.f32.mrf.mxu1 }
0x385d   :  { %2145 = vrot.lane.b32.xlu0 %v2143_v63, %s2797_s23  ;;  %v2413_v63 = vld [vmem:[#allocation7 + $0x19] ss:$0 sm:$0xff] }
0x385e   :  { %v2140_v5 = vpop.f32.mrf.mxu1 }
0x3860   :  { %v2567_v45 = vpop.f32.mrf.mxu1 }
0x38cf   :  { %v2146_v48 = vpop.permute.xlu0 %2145 }
0x38d0   :  { %v2148_v6 = vsel %vm1573_vm4, %v2137_v62, %v2146_v48 }
0x38d1   :  { %v2150_v7 = vsel %vm2149_vm13, %v2148_v6, 0.0 }
0x38d2   :  { %v2151_v8 = vrot.slane %v2150_v7, 4 }
0x38d4   :  { %v2152_v9 = vadd.f32 %v2151_v8, %v2150_v7  ;;  %v2415_v8 = vld [vmem:[#allocation7 + $0x20] ss:$0 sm:$0xff] }
0x38d6   :  { %v2153_v10 = vrot.slane %v2152_v9, 2 }
0x38d8   :  { %v2154_v12 = vadd.f32 %v2153_v10, %v2152_v9 }
0x38da   :  { %v2155_v13 = vrot.slane %v2154_v12, 1 }
0x38dc   :  { %v2156_v4 = vadd.f32 %v2155_v13, %v2154_v12 }
0x38de   :  { %v2157_v15 = vmul.f32 0.5, %v2156_v4 }
0x38e0   :  { %v2158_v16 = vmul.f32 %v2157_v15, %v2157_v15 }
0x38e2   :  { %2160 = vrot.lane.b32.xlu1 %v2158_v16, %s2797_s23 }
0x3954   :  { %v2161_v17 = vpop.permute.xlu1 %2160 }
0x3955   :  { %v2163_v18 = vsub.f32 %v2157_v15, %v2161_v17 }
0x3957   :  { %v2164_v19 = vmax.f32 %v2163_v18, 0.0 }
0x3959   :  { %v2165_v20 = vadd.f32 1e-05, %v2164_v19 }
0x395b   :  { %2702 = vrsqrt.f32 %v2165_v20 }
0x3968   :  { %v2703_v21 = vpop.eup %2702 }
0x3969   :  { %2168 = vrot.lane.b32.xlu0 %v2703_v21, %s2802_s0 }
0x39db   :  { %v2169_v22 = vpop.permute.xlu0 %2168 }
0x39dc   :  { %v2171_v24 = vmul.f32 %v2169_v22, %v1911_v23 }
0x39de   :  { %v2172_v27 = vmul.f32 %v2171_v24, %v2157_v15  ;;  %v2177_v28 = vrot.slane %v2171_v24, %v2961_v52 }
0x39e0   :  { %v2173_v29 = vsub.f32 %v1912_v26, %v2172_v27  ;;  %v2178_v30 = vmul.f32 %v2177_v28, %v2137_v62  ;;  %v2288_v62 = vsel %vm1577_vm3, %v2277_v61, 0 }
0x39e1   :  { %2575 = vmatpush3.bf16.msra.mxu1 %v2288_v62 }
0x39e2   :  { %v2182_v25 = vrot.slane %v2173_v29, %v2961_v52 }
0x39e4   :  { %v2183_v31 = vadd.f32 %v2182_v25, %v2178_v30 }
0x39e6   :  { %v2184_v32 = vmax.f32 %v2183_v31, 0.0 }
0x39e8   :  { %v2185_v33 = vmul.f32 %v2184_v32, %v2184_v32 }
0x39ea   :  { %2187 = vrot.lane.b32.xlu1 %v2185_v33, %s2797_s23 }
0x3a5c   :  { %v2188_v1 = vpop.permute.xlu1 %2187 }
0x3a5d   :  { %v2190_v2 = vsel %vm1573_vm4, %v2184_v32, %v2188_v1 }
0x3a5e   :  { %v2191_v34 = vsel %vm2149_vm13, %v2190_v2, 0.0 }
0x3a5f   :  { %v2192_v35 = vrot.slane %v2191_v34, 4 }
0x3a61   :  { %v2193_v36 = vadd.f32 %v2192_v35, %v2191_v34 }
0x3a63   :  { %v2194_v0 = vrot.slane %v2193_v36, 2 }
0x3a65   :  { %v2195_v37 = vadd.f32 %v2194_v0, %v2193_v36 }
0x3a67   :  { %v2196_v14 = vrot.slane %v2195_v37, 1 }
0x3a69   :  { %v2197_v38 = vadd.f32 %v2196_v14, %v2195_v37 }
0x3a6b   :  { %v2198_v39 = vmul.f32 0.5, %v2197_v38 }
0x3a6d   :  { %v2199_v40 = vmul.f32 %v2198_v39, %v2198_v39 }
0x3a6f   :  { %2201 = vrot.lane.b32.xlu0 %v2199_v40, %s2797_s23 }
0x3ae1   :  { %v2202_v41 = vpop.permute.xlu0 %2201 }
0x3ae2   :  { %v2204_v42 = vsub.f32 %v2198_v39, %v2202_v41 }
0x3ae4   :  { %v2205_v43 = vmax.f32 %v2204_v42, 0.0 }
0x3ae6   :  { %v2206_v44 = vadd.f32 1e-05, %v2205_v43 }
0x3ae8   :  { %2704 = vrsqrt.f32 %v2206_v44 }
0x3af5   :  { %v2705_v49 = vpop.eup %2704 }
0x3af6   :  { %2209 = vrot.lane.b32.xlu1 %v2705_v49, %s2802_s0 }
0x3b68   :  { %v2210_v51 = vpop.permute.xlu1 %2209 }
0x3b69   :  { %v2212_v53 = vmul.f32 %v2210_v51, %v1913_v50 }
0x3b6b   :  { %v2213_v55 = vmul.f32 %v2212_v53, %v2198_v39  ;;  %v2218_v56 = vrot.slane %v2212_v53, %v2961_v52 }
0x3b6d   :  { %v2214_v57 = vsub.f32 %v1914_v54, %v2213_v55  ;;  %v2219_v58 = vmul.f32 %v2218_v56, %v2184_v32 }
0x3b6f   :  { %v2223_v11 = vrot.slane %v2214_v57, %v2961_v52 }
0x3b71   :  { %v2224_v59 = vadd.f32 %v2223_v11, %v2219_v58 }
0x3b73   :  { %v2226_v60 = vpack.c.bf16 %v2224_v59, %v2224_v59 }
0x3b75   :  { %2571 = vmatmul.mubr.msk.bf16.vlgmr.msra.gmra.mxu0 %vm1573_vm4, %v2226_v60 }
0x3c35   :  { %v2271_v3 = vpop.f32.mrf.mxu0 }
0x3c36   :  { %v2272_v5 = vadd.f32 %v2413_v63, %v2271_v3 }
0x3c37   :  { %v2572_v45 = vpop.f32.mrf.mxu0 }
0x3c38   :  { %v2278_v48 = vpack.c.bf16 %v2272_v5, %v2272_v5 }
0x3c39   :  { %v2274_v6 = vpop.f32.mrf.mxu0 }
0x3c3a   :  { %2577 = vmatmul.mubr.msk.bf16.vlgmr.msra.gmra.mxu1 %vm1573_vm4, %v2278_v48 }
0x3c3b   :  { %v2573_v7 = vpop.f32.mrf.mxu0 }
0x3cfa   :  { %v2324_v52 = vpop.f32.mrf.mxu1 }
0x3cfb   :  { %v2325_v9 = vadd.f32 %v2415_v8, %v2324_v52 }
0x3cfc   :  { %v2578_v10 = vpop.f32.mrf.mxu1 }
0x3cfd   :  { %2331 = vst.msk [vmem:[#allocation8] sm:$0x3] %vm2330_vm0, %v2325_v9 }
0x3cfe   :  { %v2327_v12 = vpop.f32.mrf.mxu1 }
0x3cff   :  { %2777 = shalt.err (!%p2774_p5)
}
0x3d00   :  { %2341 = dma.vmem_to_hbm [thread:$0]  %s2339_s11, 32, %s3358_s3, [#allocation4]   ;;  %v2579_v13 = vpop.f32.mrf.mxu1 }
0x3d01   :  { %2790 = dma.done.wait [#allocation4], 32  }
0x3d02   :  { %2791 = vsyncadd [#allocation4], 4294967264 }
0x3d03   :  { %2345 = vsyncpa [#allocation3], 1 }
0x3d04   :  { %2346 = vsyncpa [#allocation6], 1 }
0x3d05   :  { %2347 = vsyncpa [#allocation4], 1 }

</bundles_post_ra>
